<compile_context>
chip_gen: v5e
topology: v5e:2x2
jax: 0.10.0
libtpu: 0.0.40
codegen_flags: <defaults>
</compile_context>

<pallas_src>
import math

import jax
import jax.numpy as jnp
from jax.experimental import pallas as pl
from jax.experimental.pallas import tpu as pltpu

IN_DIM = 403
# Original PyTorch layer dims (in, out).
LAYER_DIMS = [(403, 300), (300, 200), (200, 100), (100, 50), (50, 25), (25, 12), (12, 1)]
# Lane-padded activation widths d0..d6 (d0 = raw input width, kept unpadded).
PAD_WIDTHS = [403, 384, 256, 128, 128, 128, 128]
BN_EPS = 1e-5
TILE_MAX = 1024  # rows per grid step: multiple of 256 (v6e MXU) and safe for v7x VMEM


def _round_up(x, m):
    return ((x + m - 1) // m) * m


# ---------------------------------------------------------------------------
# Kernel
# ---------------------------------------------------------------------------
def _emci_kernel(x_ref,
                 w1, b1, w2, b2, w3, b3, w4, b4, w5, b5, w6, b6,
                 w7, b7_ref, o_ref):
    """Forward for one (TILE, 403) batch tile; all weights VMEM-resident."""
    relu = lambda v: jnp.maximum(v, 0.0)
    relu6 = lambda v: jnp.clip(v, 0.0, 6.0)

    def layer(h, w_ref, b_ref, act):
        # bf16 x bf16 -> f32 accumulation on the MXU; bias row broadcast over sublanes.
        z = jnp.dot(h, w_ref[...], preferred_element_type=jnp.float32) + b_ref[...]
        return act(z).astype(jnp.bfloat16)

    h = x_ref[...]                      # (TILE, 403) bf16
    h = layer(h, w1, b1, relu)          # (TILE, 384)
    h = layer(h, w2, b2, relu)          # (TILE, 256)
    h = layer(h, w3, b3, relu)          # (TILE, 128)
    h = layer(h, w4, b4, relu6)         # (TILE, 128)
    h = layer(h, w5, b5, relu6)         # (TILE, 128)
    h = layer(h, w6, b6, relu6)         # (TILE, 128)

    # Final 12->1 layer as an NT matmul: (1, d6) . (TILE, d6)^T -> (1, TILE),
    # so the per-tile output is lane-dense (full-width stores, no vst.msk).
    z = jax.lax.dot_general(
        w7[...], h,
        dimension_numbers=(((1,), (1,)), ((), ())),
        preferred_element_type=jnp.float32)          # (1, TILE)
    z = z + b7_ref[0]                                 # scalar bias from SMEM
    # sigmoid: exp on the EUP + approximate reciprocal on the EUP (VPU stays free).
    o_ref[...] = pl.reciprocal(1.0 + jnp.exp(-z), approx=True)


# ---------------------------------------------------------------------------
# Parameters
# ---------------------------------------------------------------------------
def init_params(key):
    """PyTorch-default-style Linear init + non-trivial BN running stats (eval mode)."""
    params = {"w": [], "b": []}
    for (fan_in, fan_out) in LAYER_DIMS:
        key, kw, kb = jax.random.split(key, 3)
        bound = 1.0 / math.sqrt(fan_in)
        # Stored already transposed: (in, out).
        params["w"].append(
            jax.random.uniform(kw, (fan_in, fan_out), jnp.float32, -bound, bound))
        params["b"].append(
            jax.random.uniform(kb, (fan_out,), jnp.float32, -bound, bound))
    key, kg, kb2, km, kv = jax.random.split(key, 5)
    gamma = jax.random.uniform(kg, (6,), jnp.float32, 0.5, 1.5)
    beta = jax.random.uniform(kb2, (6,), jnp.float32, -0.1, 0.1)
    run_mean = 0.1 * jax.random.normal(km, (6,), jnp.float32)
    run_var = jax.random.uniform(kv, (6,), jnp.float32, 0.5, 1.5)
    scale = gamma / jnp.sqrt(run_var + BN_EPS)          # s
    shift = beta - run_mean * scale                     # t   (BN eval: y = s*x + t)
    params["bn_scale"] = scale
    params["bn_shift"] = shift
    return params


def pack_params(params):
    """Fold BN into each Linear, zero-pad to lane multiples, cast weights to bf16.

    Returns a flat tuple in kernel argument order:
      (w1, b1, ..., w6, b6, w7_row, b7_scalar).
    Zero-padded weight rows guarantee padded lanes never contaminate valid outputs.
    """
    flat = []
    for k in range(6):
        in_d, out_d = LAYER_DIMS[k]
        s = params["bn_scale"][k]
        t = params["bn_shift"][k]
        w = params["w"][k] * s                       # (in, out)   folded BN scale
        b = params["b"][k] * s + t                   # (out,)      folded BN shift
        in_p, out_p = PAD_WIDTHS[k], PAD_WIDTHS[k + 1]
        w = jnp.pad(w, ((0, in_p - in_d), (0, out_p - out_d))).astype(jnp.bfloat16)
        b = jnp.pad(b.reshape(1, -1), ((0, 0), (0, out_p - out_d))).astype(jnp.float32)
        flat += [w, b]
    # Last layer (12 -> 1): store as a (1, d6_pad) bf16 row + scalar f32 bias.
    in_d, _ = LAYER_DIMS[6]
    w7 = params["w"][6].reshape(1, in_d)             # (1, 12)
    w7 = jnp.pad(w7, ((0, 0), (0, PAD_WIDTHS[6] - in_d))).astype(jnp.bfloat16)
    b7 = params["b"][6].reshape(1).astype(jnp.float32)
    flat += [w7, b7]
    return tuple(flat)


# ---------------------------------------------------------------------------
# Wrapper
# ---------------------------------------------------------------------------
@jax.jit
def emci_forward(x, packed):
    """x: (N, 1, 403) float32 -> (N, 1, 1) float32, eval-mode EMCINetwork forward."""
    n = x.shape[0]
    x2d = x.reshape(n, IN_DIM).astype(jnp.bfloat16)

    # Batch tile: multiple of 16 (bf16 sublane packing), capped at TILE_MAX.
    tile = min(TILE_MAX, _round_up(max(n, 1), 16))
    n_pad = _round_up(n, tile)
    if n_pad != n:
        x2d = jnp.pad(x2d, ((0, n_pad - n), (0, 0)))
    grid_n = n_pad // tile

    def resident(arr):  # full-array block, constant index map -> stays in VMEM
        return pl.BlockSpec(arr.shape, lambda i: (0, 0))

    in_specs = [pl.BlockSpec((tile, IN_DIM), lambda i: (i, 0))]
    in_specs += [resident(arr) for arr in packed[:-1]]
    in_specs.append(pl.BlockSpec(memory_space=pltpu.MemorySpace.SMEM))  # scalar b7

    out = pl.pallas_call(
        _emci_kernel,
        grid=(grid_n,),
        in_specs=in_specs,
        out_specs=pl.BlockSpec((None, 1, tile), lambda i: (i, 0, 0)),
        out_shape=jax.ShapeDtypeStruct((grid_n, 1, tile), jnp.float32),
        compiler_params=pltpu.CompilerParams(
            dimension_semantics=("parallel",)),
    )(x2d, *packed)

    return out.reshape(n_pad)[:n].reshape(n, 1, 1)


# ---------------------------------------------------------------------------
# Pure-JAX reference (unfolded BN, unpadded, f32) for a sanity check
# ---------------------------------------------------------------------------
def _reference_forward(x, params):
    n = x.shape[0]
    h = x.reshape(n, IN_DIM).astype(jnp.float32)
    acts = ["relu", "relu", "relu", "relu6", "relu6", "relu6"]
    for k in range(6):
        h = h @ params["w"][k] + params["b"][k]
        h = h * params["bn_scale"][k] + params["bn_shift"][k]
        h = jnp.maximum(h, 0.0) if acts[k] == "relu" else jnp.clip(h, 0.0, 6.0)
    z = h @ params["w"][6] + params["b"][6]
    return jax.nn.sigmoid(z).reshape(n, 1, 1)


if __name__ == "__main__":
    key = jax.random.PRNGKey(0)
    key, kx = jax.random.split(key)
    params = init_params(key)
    packed = pack_params(params)

    batch = 8
    x = jax.random.normal(kx, (batch, 1, 403), dtype=jnp.float32)

    out = jax.block_until_ready(emci_forward(x, packed))
    ref = _reference_forward(x, params)

    assert out.shape == (batch, 1, 1), out.shape
    max_err = float(jnp.max(jnp.abs(out - ref)))
    # bf16 matmuls + approx reciprocal vs. f32 reference: loose tolerance.
    assert max_err < 5e-2, f"mismatch vs JAX reference, max abs err = {max_err}"

    print("KERNEL_OK")
</pallas_src>

<mosaic_0001>
module attributes {stable_mosaic.version = 11 : i64} {
  func.func @_emci_kernel(%arg0: i32, %arg1: memref<16x403xbf16, #tpu.memory_space<vmem>>, %arg2: memref<403x384xbf16, #tpu.memory_space<vmem>>, %arg3: memref<1x384xf32, #tpu.memory_space<vmem>>, %arg4: memref<384x256xbf16, #tpu.memory_space<vmem>>, %arg5: memref<1x256xf32, #tpu.memory_space<vmem>>, %arg6: memref<256x128xbf16, #tpu.memory_space<vmem>>, %arg7: memref<1x128xf32, #tpu.memory_space<vmem>>, %arg8: memref<128x128xbf16, #tpu.memory_space<vmem>>, %arg9: memref<1x128xf32, #tpu.memory_space<vmem>>, %arg10: memref<128x128xbf16, #tpu.memory_space<vmem>>, %arg11: memref<1x128xf32, #tpu.memory_space<vmem>>, %arg12: memref<128x128xbf16, #tpu.memory_space<vmem>>, %arg13: memref<1x128xf32, #tpu.memory_space<vmem>>, %arg14: memref<1x128xbf16, #tpu.memory_space<vmem>>, %arg15: memref<1xf32, #tpu.memory_space<smem>>, %arg16: memref<1x1x16xf32, #tpu.memory_space<vmem>>) attributes {dimension_semantics = [#tpu.dimension_semantics<parallel>], iteration_bounds = array<i64: 1>, scalar_prefetch = 0 : i64, scratch_operands = 0 : i64, tpu.core_type = #tpu.core_type<tc>, window_params = [{transform_indices = @transform_0, window_bounds = array<i64: 16, 403>}, {pipeline_mode = #tpu.pipeline_mode<synchronous>, transform_indices = @transform_1, window_bounds = array<i64: 403, 384>}, {pipeline_mode = #tpu.pipeline_mode<synchronous>, transform_indices = @transform_2, window_bounds = array<i64: 1, 384>}, {pipeline_mode = #tpu.pipeline_mode<synchronous>, transform_indices = @transform_3, window_bounds = array<i64: 384, 256>}, {pipeline_mode = #tpu.pipeline_mode<synchronous>, transform_indices = @transform_4, window_bounds = array<i64: 1, 256>}, {pipeline_mode = #tpu.pipeline_mode<synchronous>, transform_indices = @transform_5, window_bounds = array<i64: 256, 128>}, {pipeline_mode = #tpu.pipeline_mode<synchronous>, transform_indices = @transform_6, window_bounds = array<i64: 1, 128>}, {pipeline_mode = #tpu.pipeline_mode<synchronous>, transform_indices = @transform_7, window_bounds = array<i64: 128, 128>}, {pipeline_mode = #tpu.pipeline_mode<synchronous>, transform_indices = @transform_8, window_bounds = array<i64: 1, 128>}, {pipeline_mode = #tpu.pipeline_mode<synchronous>, transform_indices = @transform_9, window_bounds = array<i64: 128, 128>}, {pipeline_mode = #tpu.pipeline_mode<synchronous>, transform_indices = @transform_10, window_bounds = array<i64: 1, 128>}, {pipeline_mode = #tpu.pipeline_mode<synchronous>, transform_indices = @transform_11, window_bounds = array<i64: 128, 128>}, {pipeline_mode = #tpu.pipeline_mode<synchronous>, transform_indices = @transform_12, window_bounds = array<i64: 1, 128>}, {pipeline_mode = #tpu.pipeline_mode<synchronous>, transform_indices = @transform_13, window_bounds = array<i64: 1, 128>}, {transform_indices = @transform_14, window_bounds = array<i64: 1>}, {transform_indices = @transform_15, window_bounds = array<i64: 1, 1, 16>}]} {
    %c0 = arith.constant 0 : index
    %c0_0 = arith.constant 0 : index
    %0 = vector.load %arg1[%c0, %c0_0] : memref<16x403xbf16, #tpu.memory_space<vmem>>, vector<16x403xbf16>
    %c0_1 = arith.constant 0 : index
    %c0_2 = arith.constant 0 : index
    %1 = vector.load %arg2[%c0_1, %c0_2] : memref<403x384xbf16, #tpu.memory_space<vmem>>, vector<403x384xbf16>
    %cst = arith.constant dense<0.000000e+00> : vector<16x384xf32>
    %2 = tpu.matmul %0, %1, %cst {dimension_numbers = #tpu.dot_dimension_numbers<[1], [0], [0], [1], [0, 0, 1, 1], [], []>} : vector<16x403xbf16>, vector<403x384xbf16>, vector<16x384xf32> -> vector<16x384xf32>
    %c0_3 = arith.constant 0 : index
    %c0_4 = arith.constant 0 : index
    %3 = vector.load %arg3[%c0_3, %c0_4] : memref<1x384xf32, #tpu.memory_space<vmem>>, vector<1x384xf32>
    %4 = vector.broadcast %3 : vector<1x384xf32> to vector<16x384xf32>
    %5 = arith.addf %2, %4 : vector<16x384xf32>
    %cst_5 = arith.constant 0.000000e+00 : f32
    %6 = vector.broadcast %cst_5 : f32 to vector<16x384xf32>
    %7 = arith.maximumf %5, %6 : vector<16x384xf32>
    %8 = arith.truncf %7 : vector<16x384xf32> to vector<16x384xbf16>
    %c0_6 = arith.constant 0 : index
    %c0_7 = arith.constant 0 : index
    %9 = vector.load %arg4[%c0_6, %c0_7] : memref<384x256xbf16, #tpu.memory_space<vmem>>, vector<384x256xbf16>
    %cst_8 = arith.constant dense<0.000000e+00> : vector<16x256xf32>
    %10 = tpu.matmul %8, %9, %cst_8 {dimension_numbers = #tpu.dot_dimension_numbers<[1], [0], [0], [1], [0, 0, 1, 1], [], []>} : vector<16x384xbf16>, vector<384x256xbf16>, vector<16x256xf32> -> vector<16x256xf32>
    %c0_9 = arith.constant 0 : index
    %c0_10 = arith.constant 0 : index
    %11 = vector.load %arg5[%c0_9, %c0_10] : memref<1x256xf32, #tpu.memory_space<vmem>>, vector<1x256xf32>
    %12 = vector.broadcast %11 : vector<1x256xf32> to vector<16x256xf32>
    %13 = arith.addf %10, %12 : vector<16x256xf32>
    %cst_11 = arith.constant 0.000000e+00 : f32
    %14 = vector.broadcast %cst_11 : f32 to vector<16x256xf32>
    %15 = arith.maximumf %13, %14 : vector<16x256xf32>
    %16 = arith.truncf %15 : vector<16x256xf32> to vector<16x256xbf16>
    %c0_12 = arith.constant 0 : index
    %c0_13 = arith.constant 0 : index
    %17 = vector.load %arg6[%c0_12, %c0_13] : memref<256x128xbf16, #tpu.memory_space<vmem>>, vector<256x128xbf16>
    %cst_14 = arith.constant dense<0.000000e+00> : vector<16x128xf32>
    %18 = tpu.matmul %16, %17, %cst_14 {dimension_numbers = #tpu.dot_dimension_numbers<[1], [0], [0], [1], [0, 0, 1, 1], [], []>} : vector<16x256xbf16>, vector<256x128xbf16>, vector<16x128xf32> -> vector<16x128xf32>
    %c0_15 = arith.constant 0 : index
    %c0_16 = arith.constant 0 : index
    %19 = vector.load %arg7[%c0_15, %c0_16] : memref<1x128xf32, #tpu.memory_space<vmem>>, vector<1x128xf32>
    %20 = vector.broadcast %19 : vector<1x128xf32> to vector<16x128xf32>
    %21 = arith.addf %18, %20 : vector<16x128xf32>
    %cst_17 = arith.constant 0.000000e+00 : f32
    %22 = vector.broadcast %cst_17 : f32 to vector<16x128xf32>
    %23 = arith.maximumf %21, %22 : vector<16x128xf32>
    %24 = arith.truncf %23 : vector<16x128xf32> to vector<16x128xbf16>
    %c0_18 = arith.constant 0 : index
    %c0_19 = arith.constant 0 : index
    %25 = vector.load %arg8[%c0_18, %c0_19] : memref<128x128xbf16, #tpu.memory_space<vmem>>, vector<128x128xbf16>
    %cst_20 = arith.constant dense<0.000000e+00> : vector<16x128xf32>
    %26 = tpu.matmul %24, %25, %cst_20 {dimension_numbers = #tpu.dot_dimension_numbers<[1], [0], [0], [1], [0, 0, 1, 1], [], []>} : vector<16x128xbf16>, vector<128x128xbf16>, vector<16x128xf32> -> vector<16x128xf32>
    %c0_21 = arith.constant 0 : index
    %c0_22 = arith.constant 0 : index
    %27 = vector.load %arg9[%c0_21, %c0_22] : memref<1x128xf32, #tpu.memory_space<vmem>>, vector<1x128xf32>
    %28 = vector.broadcast %27 : vector<1x128xf32> to vector<16x128xf32>
    %29 = arith.addf %26, %28 : vector<16x128xf32>
    %cst_23 = arith.constant 0.000000e+00 : f32
    %cst_24 = arith.constant 6.000000e+00 : f32
    %30 = vector.broadcast %cst_23 : f32 to vector<16x128xf32>
    %31 = arith.maximumf %30, %29 : vector<16x128xf32>
    %32 = vector.broadcast %cst_24 : f32 to vector<16x128xf32>
    %33 = arith.minimumf %32, %31 : vector<16x128xf32>
    %34 = arith.truncf %33 : vector<16x128xf32> to vector<16x128xbf16>
    %c0_25 = arith.constant 0 : index
    %c0_26 = arith.constant 0 : index
    %35 = vector.load %arg10[%c0_25, %c0_26] : memref<128x128xbf16, #tpu.memory_space<vmem>>, vector<128x128xbf16>
    %cst_27 = arith.constant dense<0.000000e+00> : vector<16x128xf32>
    %36 = tpu.matmul %34, %35, %cst_27 {dimension_numbers = #tpu.dot_dimension_numbers<[1], [0], [0], [1], [0, 0, 1, 1], [], []>} : vector<16x128xbf16>, vector<128x128xbf16>, vector<16x128xf32> -> vector<16x128xf32>
    %c0_28 = arith.constant 0 : index
    %c0_29 = arith.constant 0 : index
    %37 = vector.load %arg11[%c0_28, %c0_29] : memref<1x128xf32, #tpu.memory_space<vmem>>, vector<1x128xf32>
    %38 = vector.broadcast %37 : vector<1x128xf32> to vector<16x128xf32>
    %39 = arith.addf %36, %38 : vector<16x128xf32>
    %cst_30 = arith.constant 0.000000e+00 : f32
    %cst_31 = arith.constant 6.000000e+00 : f32
    %40 = vector.broadcast %cst_30 : f32 to vector<16x128xf32>
    %41 = arith.maximumf %40, %39 : vector<16x128xf32>
    %42 = vector.broadcast %cst_31 : f32 to vector<16x128xf32>
    %43 = arith.minimumf %42, %41 : vector<16x128xf32>
    %44 = arith.truncf %43 : vector<16x128xf32> to vector<16x128xbf16>
    %c0_32 = arith.constant 0 : index
    %c0_33 = arith.constant 0 : index
    %45 = vector.load %arg12[%c0_32, %c0_33] : memref<128x128xbf16, #tpu.memory_space<vmem>>, vector<128x128xbf16>
    %cst_34 = arith.constant dense<0.000000e+00> : vector<16x128xf32>
    %46 = tpu.matmul %44, %45, %cst_34 {dimension_numbers = #tpu.dot_dimension_numbers<[1], [0], [0], [1], [0, 0, 1, 1], [], []>} : vector<16x128xbf16>, vector<128x128xbf16>, vector<16x128xf32> -> vector<16x128xf32>
    %c0_35 = arith.constant 0 : index
    %c0_36 = arith.constant 0 : index
    %47 = vector.load %arg13[%c0_35, %c0_36] : memref<1x128xf32, #tpu.memory_space<vmem>>, vector<1x128xf32>
    %48 = vector.broadcast %47 : vector<1x128xf32> to vector<16x128xf32>
    %49 = arith.addf %46, %48 : vector<16x128xf32>
    %cst_37 = arith.constant 0.000000e+00 : f32
    %cst_38 = arith.constant 6.000000e+00 : f32
    %50 = vector.broadcast %cst_37 : f32 to vector<16x128xf32>
    %51 = arith.maximumf %50, %49 : vector<16x128xf32>
    %52 = vector.broadcast %cst_38 : f32 to vector<16x128xf32>
    %53 = arith.minimumf %52, %51 : vector<16x128xf32>
    %54 = arith.truncf %53 : vector<16x128xf32> to vector<16x128xbf16>
    %c0_39 = arith.constant 0 : index
    %c0_40 = arith.constant 0 : index
    %55 = vector.load %arg14[%c0_39, %c0_40] : memref<1x128xbf16, #tpu.memory_space<vmem>>, vector<1x128xbf16>
    %cst_41 = arith.constant dense<0.000000e+00> : vector<1x16xf32>
    %56 = tpu.matmul %55, %54, %cst_41 {dimension_numbers = #tpu.dot_dimension_numbers<[1], [1], [0], [0], [0, 0, 1, 0], [], []>} : vector<1x128xbf16>, vector<16x128xbf16>, vector<1x16xf32> -> vector<1x16xf32>
    %c0_42 = arith.constant 0 : index
    %57 = memref.load %arg15[%c0_42] : memref<1xf32, #tpu.memory_space<smem>>
    %58 = vector.broadcast %57 : f32 to vector<1x16xf32>
    %59 = arith.addf %56, %58 : vector<1x16xf32>
    %cst_43 = arith.constant 0.000000e+00 : f32
    %60 = vector.broadcast %cst_43 : f32 to vector<1x16xf32>
    %61 = arith.subf %60, %59 : vector<1x16xf32>
    %62 = math.exp %61 : vector<1x16xf32>
    %cst_44 = arith.constant 1.000000e+00 : f32
    %63 = vector.broadcast %cst_44 : f32 to vector<1x16xf32>
    %64 = arith.addf %63, %62 : vector<1x16xf32>
    %65 = tpu.reciprocal %64 {approx = true} : vector<1x16xf32> -> vector<1x16xf32>
    %c0_45 = arith.constant 0 : index
    %c0_46 = arith.constant 0 : index
    %c0_47 = arith.constant 0 : index
    %66 = vector.load %arg16[%c0_45, %c0_46, %c0_47] : memref<1x1x16xf32, #tpu.memory_space<vmem>>, vector<1x1x16xf32>
    %67 = vector.shape_cast %66 : vector<1x1x16xf32> to vector<1x16xf32>
    %68 = vector.shape_cast %65 : vector<1x16xf32> to vector<1x1x16xf32>
    tpu.vector_store %arg16[%c0_45, %c0_46, %c0_47], %68 {strides = array<i32>} : memref<1x1x16xf32, #tpu.memory_space<vmem>>, vector<1x1x16xf32>,
    return
  }
  func.func @transform_0(%arg0: i32) -> (i32, i32) {
    %c0_i32 = arith.constant 0 : i32
    %c0_i32_0 = arith.constant 0 : i32
    return %arg0, %c0_i32 : i32, i32
  }
  func.func @transform_1(%arg0: i32) -> (i32, i32) {
    %c0_i32 = arith.constant 0 : i32
    %c0_i32_0 = arith.constant 0 : i32
    %c0_i32_1 = arith.constant 0 : i32
    return %c0_i32, %c0_i32_0 : i32, i32
  }
  func.func @transform_2(%arg0: i32) -> (i32, i32) {
    %c0_i32 = arith.constant 0 : i32
    %c0_i32_0 = arith.constant 0 : i32
    %c0_i32_1 = arith.constant 0 : i32
    return %c0_i32, %c0_i32_0 : i32, i32
  }
  func.func @transform_3(%arg0: i32) -> (i32, i32) {
    %c0_i32 = arith.constant 0 : i32
    %c0_i32_0 = arith.constant 0 : i32
    %c0_i32_1 = arith.constant 0 : i32
    return %c0_i32, %c0_i32_0 : i32, i32
  }
  func.func @transform_4(%arg0: i32) -> (i32, i32) {
    %c0_i32 = arith.constant 0 : i32
    %c0_i32_0 = arith.constant 0 : i32
    %c0_i32_1 = arith.constant 0 : i32
    return %c0_i32, %c0_i32_0 : i32, i32
  }
  func.func @transform_5(%arg0: i32) -> (i32, i32) {
    %c0_i32 = arith.constant 0 : i32
    %c0_i32_0 = arith.constant 0 : i32
    %c0_i32_1 = arith.constant 0 : i32
    return %c0_i32, %c0_i32_0 : i32, i32
  }
  func.func @transform_6(%arg0: i32) -> (i32, i32) {
    %c0_i32 = arith.constant 0 : i32
    %c0_i32_0 = arith.constant 0 : i32
    %c0_i32_1 = arith.constant 0 : i32
    return %c0_i32, %c0_i32_0 : i32, i32
  }
  func.func @transform_7(%arg0: i32) -> (i32, i32) {
    %c0_i32 = arith.constant 0 : i32
    %c0_i32_0 = arith.constant 0 : i32
    %c0_i32_1 = arith.constant 0 : i32
    return %c0_i32, %c0_i32_0 : i32, i32
  }
  func.func @transform_8(%arg0: i32) -> (i32, i32) {
    %c0_i32 = arith.constant 0 : i32
    %c0_i32_0 = arith.constant 0 : i32
    %c0_i32_1 = arith.constant 0 : i32
    return %c0_i32, %c0_i32_0 : i32, i32
  }
  func.func @transform_9(%arg0: i32) -> (i32, i32) {
    %c0_i32 = arith.constant 0 : i32
    %c0_i32_0 = arith.constant 0 : i32
    %c0_i32_1 = arith.constant 0 : i32
    return %c0_i32, %c0_i32_0 : i32, i32
  }
  func.func @transform_10(%arg0: i32) -> (i32, i32) {
    %c0_i32 = arith.constant 0 : i32
    %c0_i32_0 = arith.constant 0 : i32
    %c0_i32_1 = arith.constant 0 : i32
    return %c0_i32, %c0_i32_0 : i32, i32
  }
  func.func @transform_11(%arg0: i32) -> (i32, i32) {
    %c0_i32 = arith.constant 0 : i32
    %c0_i32_0 = arith.constant 0 : i32
    %c0_i32_1 = arith.constant 0 : i32
    return %c0_i32, %c0_i32_0 : i32, i32
  }
  func.func @transform_12(%arg0: i32) -> (i32, i32) {
    %c0_i32 = arith.constant 0 : i32
    %c0_i32_0 = arith.constant 0 : i32
    %c0_i32_1 = arith.constant 0 : i32
    return %c0_i32, %c0_i32_0 : i32, i32
  }
  func.func @transform_13(%arg0: i32) -> (i32, i32) {
    %c0_i32 = arith.constant 0 : i32
    %c0_i32_0 = arith.constant 0 : i32
    %c0_i32_1 = arith.constant 0 : i32
    return %c0_i32, %c0_i32_0 : i32, i32
  }
  func.func @transform_14(%arg0: i32) -> i32 {
    %c0_i32 = arith.constant 0 : i32
    %c0_i32_0 = arith.constant 0 : i32
    return %c0_i32 : i32
  }
  func.func @transform_15(%arg0: i32) -> (i32, i32, i32) {
    %c0_i32 = arith.constant 0 : i32
    %c0_i32_0 = arith.constant 0 : i32
    %c0_i32_1 = arith.constant 0 : i32
    return %arg0, %c0_i32, %c0_i32_0 : i32, i32, i32
  }
}

</mosaic_0001>

<bundles_post_ra>
// kernel: emci_forward.1
= control target key start
LH: loop header
LB: loop body
LE: loop exit
PB: predicated region body
PF: predicated region fallthrough
CT: control target
= control target key end

     0   :  { %21 = vsyncpa [#allocation4], 0  ;;  %s2907_s0 = inlined_call_operand.vmem [shape: bf16[16,403], index: 0, kind: input, shape index: {}]   ;;  %s2908_s1 = inlined_call_operand.hbm [shape: bf16[403,384], index: 1, kind: input, shape index: {}]   ;;  %s2909_s2 = inlined_call_operand.vmem [shape: f32[1,384], index: 2, kind: input, shape index: {}]   ;;  %s2910_s3 = inlined_call_operand.hbm [shape: bf16[384,256], index: 3, kind: input, shape index: {}]   ;;  %s2911_s4 = inlined_call_operand.vmem [shape: f32[1,256], index: 4, kind: input, shape index: {}]   ;;  %s2912_s5 = inlined_call_operand.hbm [shape: bf16[256,128], index: 5, kind: input, shape index: {}]   ;;  %s2913_s6 = inlined_call_operand.vmem [shape: f32[1,128], index: 6, kind: input, shape index: {}]   ;;  %s2914_s7 = inlined_call_operand.vmem [shape: bf16[128,128], index: 7, kind: input, shape index: {}]   ;;  %s2915_s8 = inlined_call_operand.vmem [shape: f32[1,128], index: 8, kind: input, shape index: {}]   ;;  %s2916_s9 = inlined_call_operand.hbm [shape: bf16[128,128], index: 9, kind: input, shape index: {}]   ;;  %s2917_s10 = inlined_call_operand.vmem [shape: f32[1,128], index: 10, kind: input, shape index: {}]   ;;  %s2918_s11 = inlined_call_operand.hbm [shape: bf16[128,128], index: 11, kind: input, shape index: {}]   ;;  %s2919_s12 = inlined_call_operand.vmem [shape: f32[1,128], index: 12, kind: input, shape index: {}]   ;;  %s2920_s13 = inlined_call_operand.vmem [shape: bf16[1,128], index: 13, kind: input, shape index: {}]   ;;  %s2921_s14 = inlined_call_operand.<no memory space> [shape: f32[1], index: 14, kind: input, shape index: {}]   ;;  %s2922_s15 = inlined_call_operand.vmem [shape: f32[1,1,16], index: 15, kind: output, shape index: {}]  }
   0x1   :  { %22 = vsyncpa [#allocation6], 0  ;;  %s45_s20 = sshll.u32 %s2910_s3, 4  ;;  %s46_s20 = int_to_ptr.hbm [resolvable:$true] %s45_s20 }
   0x2   :  { %23 = vsyncpa [#allocation9], 0  ;;  %s2687_s21 = smov [#allocation5]   ;;  %s2688_s23 = smov 128  }
   0x3   :  { %s47_s22 = sshll.u32 %s2687_s21, 4  ;;  %s2689_s24 = smov 8   ;;  %s48_s22 = int_to_ptr.vmem [resolvable:$true] %s47_s22 }
   0x4   :  { %53 = dma.hbm_to_vmem [thread:$0]  %s46_s20, 6144, %s48_s22, [#allocation6], %s2688_s23, %s2688_s23, %s2689_s24  }
   0x5   :  { %s79_s27 = sshll.u32 %s2916_s9, 4  ;;  %s2690_s28 = smov [#allocation8]   ;;  %s80_s27 = int_to_ptr.hbm [resolvable:$true] %s79_s27 }
   0x6   :  { %s81_s29 = sshll.u32 %s2690_s28, 4  ;;  %s30_s17 = sshll.u32 %s2908_s1, 4  ;;  %s82_s29 = int_to_ptr.vmem [resolvable:$true] %s81_s29  ;;  %s31_s17 = int_to_ptr.hbm [resolvable:$true] %s30_s17 }
   0x7   :  { %s2691_s3 = smov 64   ;;  %s2692_s18 = smov 4  }
   0x8   :  { %87 = dma.hbm_to_vmem [thread:$0]  %s80_s27, 1024, %s82_s29, [#allocation9], %s2691_s3, %s2691_s3, %s2692_s18  }
   0x9   :  { %s2693_s19 = smov [#allocation3]   ;;  %s60_s23 = sshll.u32 %s2912_s5, 4  ;;  %s61_s23 = int_to_ptr.hbm [resolvable:$true] %s60_s23 }
   0xa   :  { %s32_s21 = sshll.u32 %s2693_s19, 4  ;;  %s2694_s9 = smov 192   ;;  %s33_s21 = int_to_ptr.vmem [resolvable:$true] %s32_s21 }
   0xb   :  { %s2695_s24 = smov 12   ;;  %s2696_s25 = smov [#allocation7]  }
   0xc   :  { %38 = dma.hbm_to_vmem [thread:$0]  %s31_s17, 9792, %s33_s21, [#allocation4], %s2694_s9, %s2694_s9, %s2695_s24  }
   0xd   :  { %s62_s26 = sshll.u32 %s2696_s25, 4  ;;  %s94_s30 = sshll.u32 %s2918_s11, 4  ;;  %s63_s26 = int_to_ptr.vmem [resolvable:$true] %s62_s26  ;;  %s95_s30 = int_to_ptr.hbm [resolvable:$true] %s94_s30 }
   0xe   :  { %68 = dma.hbm_to_vmem [thread:$0]  %s61_s23, 2048, %s63_s26, [#allocation6], %s2691_s3, %s2691_s3, %s2692_s18  }
   0xf   :  { %s2697_s27 = smov [#allocation10]  }
  0x10   :  { %s96_s29 = sshll.u32 %s2697_s27, 4  ;;  %s97_s29 = int_to_ptr.vmem [resolvable:$true] %s96_s29 }
  0x11   :  { %102 = dma.hbm_to_vmem [thread:$0]  %s95_s30, 1024, %s97_s29, [#allocation9], %s2691_s3, %s2691_s3, %s2692_s18  }
  0x12   :  { %2681 = dma.done.wait [#allocation4], 9792  }
  0x13   :  { %2682 = vsyncadd [#allocation4], 4294957504 }
  0x14   :  { %2683 = dma.done.wait [#allocation6], 8192  }
  0x15   :  { %2684 = vsyncadd [#allocation6], 4294959104 }
  0x16   :  { %2685 = dma.done.wait [#allocation9], 2048  }
  0x17   :  { %2686 = vsyncadd [#allocation9], 4294965248  ;;  %vm675_vm0 = vcmask 1040384   ;;  %vm676_vm1 = vcmask 1041408   ;;  %v2698_v0 = vmov 65535   ;;  %vm671_vm2 = vcmask 154624  }
  0x18   :  { %v677_v1 = vsel %vm675_vm0, 4294967295, %v2698_v0  ;;  %v1805_v2 = vld [vmem:[#allocation3 + $0xa8] sm:$0xf]  ;;  %v2400_v3 = vld [vmem:[#allocation3 + $0xb0] sm:$0xf0]  ;;  %vm1694_vm3 = vcmask 122880  }
  0x19   :  { %v1997_v4 = vld [vmem:[#allocation3 + $0x228] sm:$0xf]  ;;  %v1806_v5 = vor.u32 %v2400_v3, %v1805_v2  ;;  %v2448_v6 = vld [vmem:[#allocation3 + $0x230] sm:$0xf0]  ;;  %v1793_v11 = vld [vmem:[#allocation3 + $0x90] sm:$0xf] }
  0x1a   :  { %v1901_v7 = vld [vmem:[#allocation3 + $0x168] sm:$0xf]  ;;  %v2424_v8 = vld [vmem:[#allocation3 + $0x170] sm:$0xf0]  ;;  %v1998_v9 = vor.u32 %v2448_v6, %v1997_v4  ;;  %v2397_v12 = vld [vmem:[#allocation3 + $0x98] sm:$0xf0] }
  0x1b   :  { %v1902_v10 = vor.u32 %v2424_v8, %v1901_v7  ;;  %v1985_v13 = vld [vmem:[#allocation3 + $0x210] sm:$0xf]  ;;  %688 = vmatpush.bf16.msra.mxu0 %v1806_v5  ;;  %v1794_v14 = vor.u32 %v2397_v12, %v1793_v11  ;;  %v2445_v15 = vld [vmem:[#allocation3 + $0x218] sm:$0xf0]  ;;  %v1781_v21 = vld [vmem:[#allocation3 + $0x78] sm:$0xf] }
  0x1c   :  { %v1889_v16 = vld [vmem:[#allocation3 + $0x150] sm:$0xf]  ;;  %v2421_v17 = vld [vmem:[#allocation3 + $0x158] sm:$0xf0]  ;;  %716 = vmatpush.bf16.msra.mxu2 %v1998_v9  ;;  %v1986_v18 = vor.u32 %v2445_v15, %v1985_v13  ;;  %v2394_v23 = vld [vmem:[#allocation3 + $0x80] sm:$0xf0] }
  0x1d   :  { %702 = vmatpush.bf16.msra.mxu1 %v1902_v10  ;;  %v1890_v19 = vor.u32 %v2421_v17, %v1889_v16  ;;  %v2794_v20 = vld [vmem:[#allocation3 + $0x258] sm:$0x33]  ;;  %v2442_v25 = vld [vmem:[#allocation3 + $0x200] sm:$0xf0]  ;;  %v2798_v26 = vsel %vm676_vm1, %v677_v1, 0  ;;  %v1782_v30 = vor.u32 %v2394_v23, %v1781_v21 }
  0x1e   :  { %v515_v22 = vunpack.c.l.b16 %v2794_v20  ;;  %v1973_v24 = vld [vmem:[#allocation3 + $0x1f8] sm:$0xf]  ;;  %v2418_v28 = vld [vmem:[#allocation3 + $0x140] sm:$0xf0]  ;;  %v2009_v31 = vld [vmem:[#allocation3 + $0x240] sm:$0xf] }
  0x1f   :  { %v1877_v27 = vld [vmem:[#allocation3 + $0x138] sm:$0xf]  ;;  %689 = vmatpush.bf16.msra.mxu0 %v1794_v14  ;;  %v2451_v32 = vld [vmem:[#allocation3 + $0x248] sm:$0xf0]  ;;  %v1974_v33 = vor.u32 %v2442_v25, %v1973_v24  ;;  %v1769_v36 = vld [vmem:[#allocation3 + $0x60] sm:$0xf] }
  0x20   :  { %v593_v29 = vpack.c.b16 %v515_v22, %v515_v22  ;;  %717 = vmatpush.bf16.msra.mxu2 %v1986_v18  ;;  %v1878_v34 = vor.u32 %v2418_v28, %v1877_v27  ;;  %v2399_v35 = vld [vmem:[#allocation3 + $0xac] sm:$0xf]  ;;  %v1807_v39 = vld [vmem:[#allocation3 + $0xb4] sm:$0xf0]  ;;  %v1961_v40 = vld [vmem:[#allocation3 + $0x1e0] sm:$0xf]  ;;  %v2010_v44 = vor.u32 %v2451_v32, %v2009_v31 }
  0x21   :  { %703 = vmatpush.bf16.msra.mxu1 %v1890_v19  ;;  %v2391_v37 = vld [vmem:[#allocation3 + $0x68] sm:$0xf0]  ;;  %v1865_v42 = vld [vmem:[#allocation3 + $0x120] sm:$0xf]  ;;  %v1810_v46 = vor.u32 %v2399_v35, %v1807_v39  ;;  %v2396_v48 = vld [vmem:[#allocation3 + $0x94] sm:$0xf] }
  0x22   :  { %v680_v38 = vand.u32 %v2798_v26, %v593_v29  ;;  %v2439_v41 = vld [vmem:[#allocation3 + $0x1e8] sm:$0xf0]  ;;  %v1770_v45 = vor.u32 %v2391_v37, %v1769_v36  ;;  %v1757_v49 = vld [vmem:[#allocation3 + $0x48] sm:$0xf]  ;;  %v2388_v50 = vld [vmem:[#allocation3 + $0x50] sm:$0xf0] }
  0x23   :  { %v2415_v43 = vld [vmem:[#allocation3 + $0x128] sm:$0xf0]  ;;  %690 = vmatpush.bf16.msra.mxu0 %v1782_v30  ;;  %v1962_v47 = vor.u32 %v2439_v41, %v1961_v40  ;;  %v1795_v52 = vld [vmem:[#allocation3 + $0x9c] sm:$0xf0]  ;;  %v1949_v53 = vld [vmem:[#allocation3 + $0x1c8] sm:$0xf]  ;;  %v1758_v57 = vor.u32 %v2388_v50, %v1757_v49 }
  0x24   :  { %736 = vmatpush.bf16.msra.mxu3 %v680_v38  ;;  %718 = vmatpush.bf16.msra.mxu2 %v1974_v33  ;;  %v1866_v51 = vor.u32 %v2415_v43, %v1865_v42  ;;  %v2436_v54 = vld [vmem:[#allocation3 + $0x1d0] sm:$0xf0]  ;;  %v1853_v55 = vld [vmem:[#allocation3 + $0x108] sm:$0xf]  ;;  %v1798_v58 = vor.u32 %v2396_v48, %v1795_v52  ;;  %v2393_v60 = vld [vmem:[#allocation3 + $0x7c] sm:$0xf] }
  0x25   :  { %704 = vmatpush.bf16.msra.mxu1 %v1878_v34  ;;  %v2412_v56 = vld [vmem:[#allocation3 + $0x110] sm:$0xf0]  ;;  %v1950_v59 = vor.u32 %v2436_v54, %v1949_v53  ;;  %v1745_v61 = vld [vmem:[#allocation3 + $0x30] sm:$0xf]  ;;  %v2385_v62 = vld [vmem:[#allocation3 + $0x38] sm:$0xf0]  ;;  %v516_v34 = vunpack.c.h.b16 %v2794_v20 }
  0x26   :  { %v1854_v63 = vor.u32 %v2412_v56, %v1853_v55  ;;  %v1783_v0 = vld [vmem:[#allocation3 + $0x84] sm:$0xf0]  ;;  %v1937_v1 = vld [vmem:[#allocation3 + $0x1b0] sm:$0xf]  ;;  %v2433_v2 = vld [vmem:[#allocation3 + $0x1b8] sm:$0xf0]  ;;  %v1746_v5 = vor.u32 %v2385_v62, %v1745_v61 }
  0x27   :  { %691 = vmatpush.bf16.msra.mxu0 %v1770_v45  ;;  %v1841_v3 = vld [vmem:[#allocation3 + $0xf0] sm:$0xf]  ;;  %v2409_v4 = vld [vmem:[#allocation3 + $0xf8] sm:$0xf0]  ;;  %v1786_v6 = vor.u32 %v2393_v60, %v1783_v0  ;;  %v1938_v7 = vor.u32 %v2433_v2, %v1937_v1  ;;  %v2390_v8 = vld [vmem:[#allocation3 + $0x64] sm:$0xf] }
  0x28   :  { %737 = vmatpush.bf16.msra.mxu3 %v2010_v44  ;;  %719 = vmatpush.bf16.msra.mxu2 %v1962_v47  ;;  %v1733_v9 = vld [vmem:[#allocation3 + $0x18] sm:$0xf]  ;;  %v2382_v10 = vld [vmem:[#allocation3 + $0x20] sm:$0xf0]  ;;  %v1842_v11 = vor.u32 %v2409_v4, %v1841_v3  ;;  %v1771_v12 = vld [vmem:[#allocation3 + $0x6c] sm:$0xf0] }
  0x29   :  { %705 = vmatpush.bf16.msra.mxu1 %v1866_v51  ;;  %v1925_v13 = vld [vmem:[#allocation3 + $0x198] sm:$0xf]  ;;  %v2430_v14 = vld [vmem:[#allocation3 + $0x1a0] sm:$0xf0]  ;;  %v1734_v17 = vor.u32 %v2382_v10, %v1733_v9  ;;  %v2387_v18 = vld [vmem:[#allocation3 + $0x4c] sm:$0xf]  ;;  %v1774_v24 = vor.u32 %v2390_v8, %v1771_v12  ;;  %v594_v51 = vpack.c.b16 %v516_v34, %v516_v34 }
  0x2a   :  { %v1829_v15 = vld [vmem:[#allocation3 + $0xd8] sm:$0xf]  ;;  %v2406_v16 = vld [vmem:[#allocation3 + $0xe0] sm:$0xf0]  ;;  %v1721_v21 = vld [vmem:[#allocation3] sm:$0xf]  ;;  %v1926_v25 = vor.u32 %v2430_v14, %v1925_v13 }
  0x2b   :  { %692 = vmatpush.bf16.msra.mxu0 %v1758_v57  ;;  %v1759_v19 = vld [vmem:[#allocation3 + $0x54] sm:$0xf0]  ;;  %v2379_v22 = vld [vmem:[#allocation3 + $0x8] sm:$0xf0]  ;;  %v1913_v23 = vld [vmem:[#allocation3 + $0x180] sm:$0xf]  ;;  %v1830_v29 = vor.u32 %v2406_v16, %v1829_v15  ;;  %v683_v2 = vand.u32 %v2798_v26, %v594_v51 }
  0x2c   :  { %744 = vmatpush.bf16.msrb.mxu3 %v1810_v46  ;;  %720 = vmatpush.bf16.msra.mxu2 %v1950_v59  ;;  %v2375_v27 = vld [vmem:[%s2907_s0 + $0xc] sm:$0xf]  ;;  %v1715_v28 = vld [vmem:[%s2907_s0 + $0x18] sm:$0xf0]  ;;  %v1903_v32 = vld [vmem:[#allocation3 + $0x174] sm:$0xf0]  ;;  %v1722_v38 = vor.u32 %v2379_v22, %v1721_v21  ;;  %v1762_v20 = vor.u32 %v2387_v18, %v1759_v19 }
  0x2d   :  { %706 = vmatpush.bf16.msra.mxu1 %v1854_v63  ;;  %v2427_v30 = vld [vmem:[#allocation3 + $0x188] sm:$0xf0]  ;;  %v2807_v33 = vor.u32 %v2375_v27, %v1715_v28  ;;  %v1817_v35 = vld [vmem:[#allocation3 + $0xc0] sm:$0xf]  ;;  %v1999_v39 = vld [vmem:[#allocation3 + $0x234] sm:$0xf0] }
  0x2e   :  { %v2423_v31 = vld [vmem:[#allocation3 + $0x16c] sm:$0xf]  ;;  %v1705_v40 = vld [vmem:[%s2907_s0] sm:$0xf]  ;;  %v2376_v41 = vld [vmem:[%s2907_s0 + $0xc] sm:$0xf0]  ;;  %v1914_v42 = vor.u32 %v2427_v30, %v1913_v23 }
  0x2f   :  { %693 = vmatpush.bf16.msra.mxu0 %v1746_v5  ;;  %v2403_v36 = vld [vmem:[#allocation3 + $0xc8] sm:$0xf0]  ;;  %2019 = vmatmul.msk.bf16.vlgmr.msra.gmra.mxu3 %vm671_vm2, %v2807_v33  ;;  %v1713_v43 = vld [vmem:[%s2907_s0 + $0x8] sm:$0xf]  ;;  %v2377_v44 = vld [vmem:[%s2907_s0 + $0x14] sm:$0xf0]  ;;  %v1906_v46 = vor.u32 %v2423_v31, %v1903_v32  ;;  %v2830_v53 = vor.u32 %v2376_v41, %v1705_v40 }
  0x30   :  { %745 = vmatpush.bf16.msrb.mxu3 %v1798_v58  ;;  %721 = vmatpush.bf16.msra.mxu2 %v1938_v7  ;;  %v2447_v37 = vld [vmem:[#allocation3 + $0x22c] sm:$0xf]  ;;  %v2384_v45 = vld [vmem:[#allocation3 + $0x34] sm:$0xf]  ;;  %v1818_v47 = vor.u32 %v2403_v36, %v1817_v35  ;;  %v1747_v48 = vld [vmem:[#allocation3 + $0x3c] sm:$0xf0]  ;;  %v2832_v56 = vor.u32 %v2377_v44, %v1713_v43 }
  0x31   :  { %707 = vmatpush.bf16.msra.mxu1 %v1842_v11  ;;  %v2374_v49 = vld [vmem:[%s2907_s0 + $0x4] sm:$0xf]  ;;  %v1707_v50 = vld [vmem:[%s2907_s0 + $0x10] sm:$0xf0]  ;;  %v2002_v52 = vor.u32 %v2447_v37, %v1999_v39  ;;  %v1891_v55 = vld [vmem:[#allocation3 + $0x15c] sm:$0xf0]  ;;  %v1750_v59 = vor.u32 %v2384_v45, %v1747_v48 }
  0x32   :  { %v2420_v54 = vld [vmem:[#allocation3 + $0x154] sm:$0xf]  ;;  %v1987_v58 = vld [vmem:[#allocation3 + $0x21c] sm:$0xf0]  ;;  %v2834_v60 = vor.u32 %v2374_v49, %v1707_v50  ;;  %v2381_v61 = vld [vmem:[#allocation3 + $0x1c] sm:$0xf] }
  0x33   :  { %694 = vmatpush.bf16.msra.mxu0 %v1734_v17  ;;  %v2444_v57 = vld [vmem:[#allocation3 + $0x214] sm:$0xf]  ;;  %v1894_v62 = vor.u32 %v2420_v54, %v1891_v55  ;;  %v1735_v63 = vld [vmem:[#allocation3 + $0x24] sm:$0xf0]  ;;  %v2417_v0 = vld [vmem:[#allocation3 + $0x13c] sm:$0xf] }
  0x34   :  { %746 = vmatpush.bf16.msrb.mxu3 %v1786_v6  ;;  %722 = vmatpush.bf16.msra.mxu2 %v1926_v25  ;;  %v1879_v1 = vld [vmem:[#allocation3 + $0x144] sm:$0xf0]  ;;  %v1990_v3 = vor.u32 %v2444_v57, %v1987_v58  ;;  %v2441_v4 = vld [vmem:[#allocation3 + $0x1fc] sm:$0xf]  ;;  %v2450_v5 = vld [vmem:[#allocation3 + $0x244] sm:$0xf]  ;;  %v1738_v10 = vor.u32 %v2381_v61, %v1735_v63 }
  0x35   :  { %708 = vmatpush.bf16.msra.mxu1 %v1830_v29  ;;  %v2011_v6 = vld [vmem:[#allocation3 + $0x24c] sm:$0xf0]  ;;  %v1975_v7 = vld [vmem:[#allocation3 + $0x204] sm:$0xf0]  ;;  %v2425_v9 = vld [vmem:[#allocation3 + $0x178] sm:$0xf0]  ;;  %v1882_v12 = vor.u32 %v2417_v0, %v1879_v1 }
  0x36   :  { %v1909_v8 = vld [vmem:[#allocation3 + $0x170] sm:$0xf]  ;;  %v2378_v11 = vld [vmem:[#allocation3 + $0x4] sm:$0xf]  ;;  %v2401_v15 = vld [vmem:[#allocation3 + $0xb8] sm:$0xf0]  ;;  %v2014_v16 = vor.u32 %v2450_v5, %v2011_v6  ;;  %v1978_v17 = vor.u32 %v2441_v4, %v1975_v7 }
  0x37   :  { %695 = vmatpush.bf16.msra.mxu0 %v1722_v38  ;;  %v1723_v13 = vld [vmem:[#allocation3 + $0xc] sm:$0xf0]  ;;  %v2414_v18 = vld [vmem:[#allocation3 + $0x124] sm:$0xf]  ;;  %v1910_v21 = vor.u32 %v2425_v9, %v1909_v8  ;;  %v1801_v30 = vld [vmem:[#allocation3 + $0x98] sm:$0xf] }
  0x38   :  { %747 = vmatpush.bf16.msrb.mxu3 %v1774_v24  ;;  %723 = vmatpush.bf16.msra.mxu2 %v1914_v42  ;;  %v1813_v14 = vld [vmem:[#allocation3 + $0xb0] sm:$0xf]  ;;  %v2438_v22 = vld [vmem:[#allocation3 + $0x1e4] sm:$0xf]  ;;  %v1897_v24 = vld [vmem:[#allocation3 + $0x158] sm:$0xf]  ;;  %v1726_v27 = vor.u32 %v2378_v11, %v1723_v13 }
  0x39   :  { %709 = vmatpush.bf16.msra.mxu1 %v1818_v47  ;;  %v1867_v19 = vld [vmem:[#allocation3 + $0x12c] sm:$0xf0]  ;;  %v2422_v25 = vld [vmem:[#allocation3 + $0x160] sm:$0xf0]  ;;  %v1814_v28 = vor.u32 %v2401_v15, %v1813_v14  ;;  %v2411_v34 = vld [vmem:[#allocation3 + $0x10c] sm:$0xf] }
  0x3a   :  { %696 = vmatmul.bf16.vlgmr.msra.gmra.mxu0 %v2830_v53  ;;  %v1963_v23 = vld [vmem:[#allocation3 + $0x1ec] sm:$0xf0]  ;;  %v1870_v29 = vor.u32 %v2414_v18, %v1867_v19  ;;  %v2398_v31 = vld [vmem:[#allocation3 + $0xa0] sm:$0xf0]  ;;  %v1855_v35 = vld [vmem:[#allocation3 + $0x114] sm:$0xf0]  ;;  %v1898_v36 = vor.u32 %v2422_v25, %v1897_v24 }
  0x3b   :  { %758 = vmatpush.bf16.msrb.mxu0 %v1906_v46  ;;  %724 = vmatmul.bf16.vlgmr.msra.gmra.mxu2 %v2832_v56  ;;  %v1966_v32 = vor.u32 %v2438_v22, %v1963_v23  ;;  %v2435_v37 = vld [vmem:[#allocation3 + $0x1cc] sm:$0xf]  ;;  %v1951_v38 = vld [vmem:[#allocation3 + $0x1d4] sm:$0xf0]  ;;  %v1885_v39 = vld [vmem:[#allocation3 + $0x140] sm:$0xf]  ;;  %v1802_v41 = vor.u32 %v2398_v31, %v1801_v30 }
  0x3c   :  { %748 = vmatpush.bf16.msrb.mxu3 %v1762_v20  ;;  %710 = vmatmul.bf16.vlgmr.msra.gmra.mxu1 %v2834_v60  ;;  %v2419_v40 = vld [vmem:[#allocation3 + $0x148] sm:$0xf0]  ;;  %v1858_v20 = vor.u32 %v2411_v34, %v1855_v35  ;;  %v1789_v42 = vld [vmem:[#allocation3 + $0x80] sm:$0xf]  ;;  %v1954_v44 = vor.u32 %v2435_v37, %v1951_v38  ;;  %v2408_v45 = vld [vmem:[#allocation3 + $0xf4] sm:$0xf] }
  0x3d   :  { %772 = vmatpush.bf16.msrb.mxu1 %v2002_v52  ;;  %792 = vmatpush.bf16.msrb.mxu2 %v683_v2  ;;  %v2395_v43 = vld [vmem:[#allocation3 + $0x88] sm:$0xf0]  ;;  %v1843_v46 = vld [vmem:[#allocation3 + $0xfc] sm:$0xf0]  ;;  %v1886_v47 = vor.u32 %v2419_v40, %v1885_v39  ;;  %v2432_v48 = vld [vmem:[#allocation3 + $0x1b4] sm:$0xf] }
  0x3e   :  { %v1939_v49 = vld [vmem:[#allocation3 + $0x1bc] sm:$0xf0]  ;;  %v1873_v50 = vld [vmem:[#allocation3 + $0x128] sm:$0xf]  ;;  %v2416_v51 = vld [vmem:[#allocation3 + $0x130] sm:$0xf0]  ;;  %v1790_v54 = vor.u32 %v2395_v43, %v1789_v42  ;;  %v1846_v55 = vor.u32 %v2408_v45, %v1843_v46 }
  0x3f   :  { %759 = vmatpush.bf16.msrb.mxu0 %v1894_v62  ;;  %v235_v52 = vld [vmem:[#allocation3 + $0x260] sm:$0x3]  ;;  %v1777_v57 = vld [vmem:[#allocation3 + $0x68] sm:$0xf]  ;;  %v2392_v58 = vld [vmem:[#allocation3 + $0x70] sm:$0xf0]  ;;  %v1874_v63 = vor.u32 %v2416_v51, %v1873_v50 }
  0x40   :  { %749 = vmatpush.bf16.msrb.mxu3 %v1750_v59  ;;  %v1942_v59 = vor.u32 %v2432_v48, %v1939_v49  ;;  %v2405_v61 = vld [vmem:[#allocation3 + $0xdc] sm:$0xf]  ;;  %v1831_v62 = vld [vmem:[#allocation3 + $0xe4] sm:$0xf0]  ;;  %v517_v1 = vunpack.c.l.b16 %v235_v52  ;;  %v1765_v5 = vld [vmem:[#allocation3 + $0x50] sm:$0xf]  ;;  %v1778_v8 = vor.u32 %v2392_v58, %v1777_v57 }
  0x41   :  { %773 = vmatpush.bf16.msrb.mxu1 %v1990_v3  ;;  %793 = vmatpush.bf16.msrb.mxu2 %v2014_v16  ;;  %v2429_v0 = vld [vmem:[#allocation3 + $0x19c] sm:$0xf]  ;;  %v1927_v2 = vld [vmem:[#allocation3 + $0x1a4] sm:$0xf0]  ;;  %v1861_v3 = vld [vmem:[#allocation3 + $0x110] sm:$0xf]  ;;  %v1834_v9 = vor.u32 %v2405_v61, %v1831_v62 }
  0x42   :  { %v2413_v4 = vld [vmem:[#allocation3 + $0x118] sm:$0xf0]  ;;  %v2402_v7 = vld [vmem:[#allocation3 + $0xc4] sm:$0xf]  ;;  %v1819_v11 = vld [vmem:[#allocation3 + $0xcc] sm:$0xf0]  ;;  %v595_v14 = vpack.c.b16 %v517_v1, %v517_v1 }
  0x43   :  { %760 = vmatpush.bf16.msrb.mxu0 %v1882_v12  ;;  %v2389_v6 = vld [vmem:[#allocation3 + $0x58] sm:$0xf0]  ;;  %v1862_v12 = vor.u32 %v2413_v4, %v1861_v3  ;;  %v2005_v13 = vld [vmem:[#allocation3 + $0x230] sm:$0xf]  ;;  %v2426_v16 = vld [vmem:[#allocation3 + $0x184] sm:$0xf]  ;;  %v1822_v22 = vor.u32 %v2402_v7, %v1819_v11 }
  0x44   :  { %750 = vmatpush.bf16.msrb.mxu3 %v1738_v10  ;;  %v1930_v10 = vor.u32 %v2429_v0, %v1927_v2  ;;  %v2449_v15 = vld [vmem:[#allocation3 + $0x238] sm:$0xf0]  ;;  %v1849_v18 = vld [vmem:[#allocation3 + $0xf8] sm:$0xf]  ;;  %v2410_v19 = vld [vmem:[#allocation3 + $0x100] sm:$0xf0] }
  0x45   :  { %774 = vmatpush.bf16.msrb.mxu1 %v1978_v17  ;;  %814 = vmatpush.bf16.msra.mxu2 %v1910_v21  ;;  %v1915_v17 = vld [vmem:[#allocation3 + $0x18c] sm:$0xf0]  ;;  %v1766_v21 = vor.u32 %v2389_v6, %v1765_v5  ;;  %v2006_v23 = vor.u32 %v2449_v15, %v2005_v13  ;;  %v1753_v25 = vld [vmem:[#allocation3 + $0x38] sm:$0xf]  ;;  %v2446_v31 = vld [vmem:[#allocation3 + $0x220] sm:$0xf0] }
  0x46   :  { %v1918_v24 = vor.u32 %v2426_v16, %v1915_v17  ;;  %v1993_v30 = vld [vmem:[#allocation3 + $0x218] sm:$0xf]  ;;  %v2407_v34 = vld [vmem:[#allocation3 + $0xe8] sm:$0xf0]  ;;  %v2017_v35 = vld [vmem:[#allocation3 + $0x248] sm:$0xf] }
  0x47   :  { %761 = vmatpush.bf16.msrb.mxu0 %v1870_v29  ;;  %v1850_v29 = vor.u32 %v2410_v19, %v1849_v18  ;;  %v1994_v38 = vor.u32 %v2446_v31, %v1993_v30  ;;  %v1741_v39 = vld [vmem:[#allocation3 + $0x20] sm:$0xf]  ;;  %v2383_v40 = vld [vmem:[#allocation3 + $0x28] sm:$0xf0]  ;;  %v1825_v43 = vld [vmem:[#allocation3 + $0xc8] sm:$0xf] }
  0x48   :  { %751 = vmatpush.bf16.msrb.mxu3 %v1726_v27  ;;  %v2386_v27 = vld [vmem:[#allocation3 + $0x40] sm:$0xf0]  ;;  %v2443_v42 = vld [vmem:[#allocation3 + $0x208] sm:$0xf0]  ;;  %v1742_v45 = vor.u32 %v2383_v40, %v1741_v39  ;;  %v2380_v48 = vld [vmem:[#allocation3 + $0x10] sm:$0xf0] }
  0x49   :  { %775 = vmatpush.bf16.msrb.mxu1 %v1966_v32  ;;  %815 = vmatpush.bf16.msra.mxu2 %v1898_v36  ;;  %v1837_v32 = vld [vmem:[#allocation3 + $0xe0] sm:$0xf]  ;;  %v2452_v36 = vld [vmem:[#allocation3 + $0x250] sm:$0xf0]  ;;  %v1754_v37 = vor.u32 %v2386_v27, %v1753_v25  ;;  %v1969_v50 = vld [vmem:[#allocation3 + $0x1e8] sm:$0xf] }
  0x4a   :  { %v2440_v51 = vld [vmem:[#allocation3 + $0x1f0] sm:$0xf0]  ;;  %v1957_v58 = vld [vmem:[#allocation3 + $0x1d0] sm:$0xf]  ;;  %v2072_v62 = vld [vmem:[#allocation5 + $0x60] sm:$0xf] }
  0x4b   :  { %752 = vmatmul.bf16.vlgmr.msrb.gmra.mxu3 %v2830_v53  ;;  %762 = vmatpush.bf16.msrb.mxu0 %v1858_v20  ;;  %v1981_v20 = vld [vmem:[#allocation3 + $0x200] sm:$0xf]  ;;  %v2080_v52 = vld [vmem:[#allocation5 + $0x70] sm:$0xf]  ;;  %v1970_v57 = vor.u32 %v2440_v51, %v1969_v50  ;;  %v1945_v1 = vld [vmem:[#allocation3 + $0x1b8] sm:$0xf] }
  0x4c   :  { %800 = vmatpush.bf16.msra.mxu3 %v1814_v28  ;;  %2020 = vmatmul.msk.bf16.vlgmr.msrb.gmra.mxu2 %vm671_vm2, %v2807_v33  ;;  %v686_v28 = vand.u32 %v2798_v26, %v595_v14  ;;  %v2018_v26 = vor.u32 %v2452_v36, %v2017_v35  ;;  %v1982_v46 = vor.u32 %v2443_v42, %v1981_v20  ;;  %v2434_v2 = vld [vmem:[#allocation3 + $0x1c0] sm:$0xf0]  ;;  %v2064_v4 = vld [vmem:[#allocation5 + $0x50] sm:$0xf]  ;;  %v2464_v5 = vld [vmem:[#allocation5 + $0x54] sm:$0xf0] }
  0x4d   :  { %776 = vmatpush.bf16.msrb.mxu1 %v1954_v44  ;;  %816 = vmatpush.bf16.msra.mxu2 %v1886_v47  ;;  %v2404_v44 = vld [vmem:[#allocation3 + $0xd0] sm:$0xf0]  ;;  %v1729_v47 = vld [vmem:[#allocation3 + $0x8] sm:$0xf]  ;;  %v1946_v6 = vor.u32 %v2434_v2, %v1945_v1  ;;  %v1933_v7 = vld [vmem:[#allocation3 + $0x1a0] sm:$0xf] }
  0x4e   :  { %v1826_v49 = vor.u32 %v2404_v44, %v1825_v43  ;;  %v2462_v11 = vld [vmem:[#allocation5 + $0x44] sm:$0xf0]  ;;  %v2428_v13 = vld [vmem:[#allocation3 + $0x190] sm:$0xf0]  ;;  %v2082_v15 = vld [vmem:[#allocation5 + $0x78] sm:$0xf0] }
  0x4f   :  { %763 = vmatpush.bf16.msrb.mxu0 %v1846_v55  ;;  %v1730_v55 = vor.u32 %v2380_v48, %v1729_v47  ;;  %v2465_v18 = vld [vmem:[#allocation5 + $0x64] sm:$0xf]  ;;  %v2074_v19 = vld [vmem:[#allocation5 + $0x68] sm:$0xf0]  ;;  %v2460_v25 = vld [vmem:[#allocation5 + $0x34] sm:$0xf0] }
  0x50   :  { %801 = vmatpush.bf16.msra.mxu3 %v1802_v41  ;;  %v1838_v41 = vor.u32 %v2407_v34, %v1837_v32  ;;  %v2461_v27 = vld [vmem:[#allocation5 + $0x44] sm:$0xf]  ;;  %v2040_v31 = vld [vmem:[#allocation5 + $0x20] sm:$0xf]  ;;  %v2458_v32 = vld [vmem:[#allocation5 + $0x24] sm:$0xf0] }
  0x51   :  { %777 = vmatpush.bf16.msrb.mxu1 %v1942_v59  ;;  %817 = vmatpush.bf16.msra.mxu2 %v1874_v63  ;;  %v2437_v59 = vld [vmem:[#allocation3 + $0x1d8] sm:$0xf0]  ;;  %v2466_v63 = vld [vmem:[#allocation5 + $0x64] sm:$0xf0]  ;;  %v2459_v34 = vld [vmem:[#allocation5 + $0x34] sm:$0xf]  ;;  %v2041_v35 = vor.u32 %v2458_v32, %v2040_v31 }
  0x52   :  { %v1958_v0 = vor.u32 %v2437_v59, %v1957_v58  ;;  %v2073_v3 = vor.u32 %v2466_v63, %v2072_v62  ;;  %v2050_v36 = vld [vmem:[#allocation5 + $0x38] sm:$0xf0]  ;;  %v2457_v39 = vld [vmem:[#allocation5 + $0x24] sm:$0xf]  ;;  %v2144_v42 = vld [vmem:[#allocation5 + $0xf0] sm:$0xf] }
  0x53   :  { %764 = vmatpush.bf16.msrb.mxu0 %v1834_v9  ;;  %v2065_v9 = vor.u32 %v2464_v5, %v2064_v4  ;;  %v2024_v44 = vld [vmem:[#allocation5] sm:$0xf]  ;;  %v2034_v48 = vld [vmem:[#allocation5 + $0x18] sm:$0xf0]  ;;  %v2453_v58 = vld [vmem:[#allocation5 + $0x4] sm:$0xf] }
  0x54   :  { %802 = vmatpush.bf16.msra.mxu3 %v1790_v54  ;;  %v2468_v54 = vld [vmem:[#allocation5 + $0x74] sm:$0xf0]  ;;  %v2146_v50 = vld [vmem:[#allocation5 + $0xf8] sm:$0xf0]  ;;  %v2026_v59 = vld [vmem:[#allocation5 + $0x8] sm:$0xf0] }
  0x55   :  { %778 = vmatpush.bf16.msrb.mxu1 %v1930_v10  ;;  %818 = vmatpush.bf16.msra.mxu2 %v1862_v12  ;;  %v2081_v61 = vor.u32 %v2468_v54, %v2080_v52  ;;  %v2056_v10 = vld [vmem:[#allocation5 + $0x40] sm:$0xf]  ;;  %v1921_v12 = vld [vmem:[#allocation3 + $0x188] sm:$0xf]  ;;  %v2138_v63 = vld [vmem:[#allocation5 + $0xe8] sm:$0xf0] }
  0x56   :  { %v2057_v14 = vor.u32 %v2462_v11, %v2056_v10  ;;  %v1922_v16 = vor.u32 %v2428_v13, %v1921_v12  ;;  %v2136_v54 = vld [vmem:[#allocation5 + $0xe0] sm:$0xf]  ;;  %v2481_v62 = vld [vmem:[#allocation5 + $0xe4] sm:$0xf]  ;;  %v2128_v1 = vld [vmem:[#allocation5 + $0xd0] sm:$0xf] }
  0x57   :  { %765 = vmatpush.bf16.msrb.mxu0 %v1822_v22  ;;  %v2463_v22 = vld [vmem:[#allocation5 + $0x54] sm:$0xf]  ;;  %v2480_v2 = vld [vmem:[#allocation5 + $0xd4] sm:$0xf0]  ;;  %v2130_v5 = vld [vmem:[#allocation5 + $0xd8] sm:$0xf0] }
  0x58   :  { %803 = vmatpush.bf16.msra.mxu3 %v1778_v8  ;;  %v2431_v8 = vld [vmem:[#allocation3 + $0x1a8] sm:$0xf0]  ;;  %v2479_v4 = vld [vmem:[#allocation5 + $0xd4] sm:$0xf]  ;;  %v2854_v10 = vld [vmem:[%s2909_s2] sm:$0x7] }
  0x59   :  { %779 = vmatpush.bf16.msrb.mxu1 %v1918_v24  ;;  %819 = vmatpush.bf16.msra.mxu2 %v1850_v29  ;;  %v2048_v24 = vld [vmem:[#allocation5 + $0x30] sm:$0xf]  ;;  %v2058_v29 = vld [vmem:[#allocation5 + $0x48] sm:$0xf0]  ;;  %v2477_v11 = vld [vmem:[#allocation5 + $0xc4] sm:$0xf] }
  0x5a   :  { %766 = vmatmul.bf16.vlgmr.msrb.gmra.mxu0 %v2834_v60  ;;  %v2061_v30 = vor.u32 %v2461_v27, %v2058_v29  ;;  %v238_v13 = vperm.slane %v2854_v10, 0  ;;  %v2473_v27 = vld [vmem:[#allocation5 + $0xa4] sm:$0xf]  ;;  %v2096_v31 = vld [vmem:[#allocation5 + $0x90] sm:$0xf] }
  0x5b   :  { %828 = vmatpush.bf16.msra.mxu0 %v2006_v23  ;;  %v2066_v23 = vld [vmem:[#allocation5 + $0x58] sm:$0xf0]  ;;  %v2472_v32 = vld [vmem:[#allocation5 + $0x94] sm:$0xf0] }
  0x5c   :  { %804 = vmatpush.bf16.msra.mxu3 %v1766_v21  ;;  %780 = vmatmul.bf16.vlgmr.msrb.gmra.mxu1 %v2832_v56  ;;  %v2077_v21 = vor.u32 %v2465_v18, %v2074_v19  ;;  %v2114_v18 = vld [vmem:[#allocation5 + $0xb8] sm:$0xf0] }
  0x5d   :  { %848 = vmatpush.bf16.msra.mxu1 %v686_v28  ;;  %820 = vmatpush.bf16.msra.mxu2 %v1838_v41  ;;  %v2049_v28 = vor.u32 %v2460_v25, %v2048_v24  ;;  %v2042_v41 = vld [vmem:[#allocation5 + $0x28] sm:$0xf0] }
  0x5e   :  { %v2045_v20 = vor.u32 %v2457_v39, %v2042_v41 }
  0x5f   :  { %829 = vmatpush.bf16.msra.mxu0 %v1994_v38  ;;  %v2456_v38 = vld [vmem:[#allocation5 + $0x14] sm:$0xf0] }
  0x60   :  { %805 = vmatpush.bf16.msra.mxu3 %v1754_v37  ;;  %v2053_v37 = vor.u32 %v2459_v34, %v2050_v36 }
  0x61   :  { %849 = vmatpush.bf16.msra.mxu1 %v2018_v26  ;;  %821 = vmatpush.bf16.msra.mxu2 %v1826_v49  ;;  %v2484_v26 = vld [vmem:[#allocation5 + $0xf4] sm:$0xf0]  ;;  %v2483_v49 = vld [vmem:[#allocation5 + $0xf4] sm:$0xf] }
  0x62   :  { %v2145_v43 = vor.u32 %v2484_v26, %v2144_v42  ;;  %v2149_v52 = vor.u32 %v2483_v49, %v2146_v50  ;;  %v2470_v42 = vld [vmem:[#allocation5 + $0x84] sm:$0xf0]  ;;  %v2469_v49 = vld [vmem:[#allocation5 + $0x84] sm:$0xf] }
  0x63   :  { %830 = vmatpush.bf16.msra.mxu0 %v1982_v46  ;;  %v2455_v46 = vld [vmem:[#allocation5 + $0x14] sm:$0xf] }
  0x64   :  { %806 = vmatpush.bf16.msra.mxu3 %v1742_v45  ;;  %822 = vmatmul.bf16.vlgmr.msra.gmra.mxu2 %v2834_v60  ;;  %v1934_v60 = vor.u32 %v2431_v8, %v1933_v7  ;;  %v2454_v45 = vld [vmem:[#allocation5 + $0x4] sm:$0xf0]  ;;  %v2037_v51 = vor.u32 %v2455_v46, %v2034_v48  ;;  %v2120_v7 = vld [vmem:[#allocation5 + $0xc0] sm:$0xf]  ;;  %v2210_v48 = vld [vmem:[#allocation5 + $0x178] sm:$0xf0] }
  0x65   :  { %v2025_v47 = vor.u32 %v2454_v45, %v2024_v44  ;;  %1173 = vmatpush.bf16.msrb.mxu1 %v2145_v43  ;;  %v2478_v8 = vld [vmem:[#allocation5 + $0xc4] sm:$0xf0]  ;;  %v2208_v43 = vld [vmem:[#allocation5 + $0x170] sm:$0xf]  ;;  %v2500_v44 = vld [vmem:[#allocation5 + $0x174] sm:$0xf0] }
  0x66   :  { %v2499_v45 = vld [vmem:[#allocation5 + $0x174] sm:$0xf] }
  0x67   :  { %831 = vmatpush.bf16.msra.mxu0 %v1970_v57  ;;  %v2213_v50 = vor.u32 %v2499_v45, %v2210_v48  ;;  %v2152_v48 = vld [vmem:[#allocation5 + $0x100] sm:$0xf] }
  0x68   :  { %807 = vmatpush.bf16.msra.mxu3 %v1730_v55  ;;  %v2482_v55 = vld [vmem:[#allocation5 + $0xe4] sm:$0xf0] }
  0x69   :  { %v2137_v57 = vor.u32 %v2482_v55, %v2136_v54 }
  0x6b   :  { %808 = vmatmul.bf16.vlgmr.msra.gmra.mxu3 %v2830_v53  ;;  %832 = vmatpush.bf16.msra.mxu0 %v1958_v0  ;;  %v2467_v53 = vld [vmem:[#allocation5 + $0x74] sm:$0xf]  ;;  %v2141_v0 = vor.u32 %v2481_v62, %v2138_v63  ;;  %v2497_v63 = vld [vmem:[#allocation5 + $0x164] sm:$0xf] }
  0x6c   :  { %1159 = vmatpush.bf16.msrb.mxu3 %v2081_v61  ;;  %2021 = vmatmul.msk.bf16.vlgmr.msra.gmra.mxu1 %vm671_vm2, %v2807_v33  ;;  %v2085_v17 = vor.u32 %v2467_v53, %v2082_v15  ;;  %v2069_v33 = vor.u32 %v2463_v22, %v2066_v23  ;;  %v2029_v61 = vor.u32 %v2453_v58, %v2026_v59  ;;  %v2476_v53 = vld [vmem:[#allocation5 + $0xb4] sm:$0xf0]  ;;  %v2104_v23 = vld [vmem:[#allocation5 + $0xa0] sm:$0xf]  ;;  %v2498_v59 = vld [vmem:[#allocation5 + $0x164] sm:$0xf0] }
  0x6d   :  { %1174 = vmatpush.bf16.msrb.mxu1 %v2137_v57  ;;  %v2200_v58 = vld [vmem:[#allocation5 + $0x160] sm:$0xf] }
  0x6e   :  { %v2201_v62 = vor.u32 %v2498_v59, %v2200_v58 }
  0x6f   :  { %833 = vmatpush.bf16.msra.mxu0 %v1946_v6  ;;  %v2133_v6 = vor.u32 %v2479_v4, %v2130_v5  ;;  %v2192_v4 = vld [vmem:[#allocation5 + $0x150] sm:$0xf]  ;;  %v2496_v5 = vld [vmem:[#allocation5 + $0x154] sm:$0xf0] }
  0x70   :  { %1160 = vmatpush.bf16.msrb.mxu3 %v2073_v3  ;;  %v2129_v3 = vor.u32 %v2480_v2, %v2128_v1 }
  0x72   :  { %1175 = vmatpush.bf16.msrb.mxu1 %v2129_v3 }
  0x73   :  { %834 = vmatpush.bf16.msra.mxu0 %v1934_v60  ;;  %v2122_v60 = vld [vmem:[#allocation5 + $0xc8] sm:$0xf0] }
  0x74   :  { %1161 = vmatpush.bf16.msrb.mxu3 %v2065_v9  ;;  %v2121_v9 = vor.u32 %v2478_v8, %v2120_v7  ;;  %v2125_v12 = vor.u32 %v2477_v11, %v2122_v60  ;;  %v2193_v8 = vor.u32 %v2496_v5, %v2192_v4 }
  0x76   :  { %1176 = vmatpush.bf16.msrb.mxu1 %v2121_v9  ;;  %v2194_v9 = vld [vmem:[#allocation5 + $0x158] sm:$0xf0] }
  0x77   :  { %835 = vmatpush.bf16.msra.mxu0 %v1922_v16 }
  0x78   :  { %1162 = vmatpush.bf16.msrb.mxu3 %v2057_v14  ;;  %v2112_v14 = vld [vmem:[#allocation5 + $0xb0] sm:$0xf] }
  0x79   :  { %v2113_v15 = vor.u32 %v2476_v53, %v2112_v14  ;;  %v2184_v14 = vld [vmem:[#allocation5 + $0x140] sm:$0xf]  ;;  %v2494_v53 = vld [vmem:[#allocation5 + $0x144] sm:$0xf0] }
  0x7a   :  { %836 = vmatmul.bf16.vlgmr.msra.gmra.mxu0 %v2832_v56  ;;  %v2032_v56 = vld [vmem:[#allocation5 + $0x10] sm:$0xf] }
  0x7b   :  { %1201 = vmatpush.bf16.msrb.mxu0 %v2085_v17  ;;  %v2033_v40 = vor.u32 %v2456_v38, %v2032_v56  ;;  %v2475_v17 = vld [vmem:[#allocation5 + $0xb4] sm:$0xf]  ;;  %1177 = vmatpush.bf16.msrb.mxu1 %v2113_v15  ;;  %v2098_v56 = vld [vmem:[#allocation5 + $0x98] sm:$0xf0]  ;;  %v2493_v15 = vld [vmem:[#allocation5 + $0x144] sm:$0xf] }
  0x7c   :  { %1163 = vmatpush.bf16.msrb.mxu3 %v2049_v28  ;;  %v2117_v19 = vor.u32 %v2475_v17, %v2114_v18  ;;  %v2106_v28 = vld [vmem:[#allocation5 + $0xa8] sm:$0xf0] }
  0x7d   :  { %v2109_v29 = vor.u32 %v2473_v27, %v2106_v28  ;;  %v2186_v17 = vld [vmem:[#allocation5 + $0x148] sm:$0xf0] }
  0x7e   :  { %v2189_v18 = vor.u32 %v2493_v15, %v2186_v17 }
  0x7f   :  { %1202 = vmatpush.bf16.msrb.mxu0 %v2077_v21 }
  0x80   :  { %1164 = vmatpush.bf16.msrb.mxu3 %v2041_v35  ;;  %v2097_v35 = vor.u32 %v2472_v32, %v2096_v31  ;;  %v2168_v31 = vld [vmem:[#allocation5 + $0x120] sm:$0xf]  ;;  %v2490_v32 = vld [vmem:[#allocation5 + $0x124] sm:$0xf0] }
  0x83   :  { %1203 = vmatpush.bf16.msrb.mxu0 %v2069_v33  ;;  %v2474_v33 = vld [vmem:[#allocation5 + $0xa4] sm:$0xf0] }
  0x84   :  { %1165 = vmatpush.bf16.msrb.mxu3 %v2033_v40  ;;  %v2105_v24 = vor.u32 %v2474_v33, %v2104_v23  ;;  %v2491_v23 = vld [vmem:[#allocation5 + $0x134] sm:$0xf] }
  0x86   :  { %1178 = vmatpush.bf16.msrb.mxu1 %v2105_v24  ;;  %v2178_v24 = vld [vmem:[#allocation5 + $0x138] sm:$0xf0] }
  0x87   :  { %1204 = vmatpush.bf16.msrb.mxu0 %v2061_v30 }
  0x88   :  { %1166 = vmatpush.bf16.msrb.mxu3 %v2025_v47  ;;  %v2209_v47 = vor.u32 %v2500_v44, %v2208_v43 }
  0x8a   :  { %1179 = vmatpush.bf16.msrb.mxu1 %v2097_v35  ;;  %1187 = vmatpush.bf16.msrb.mxu2 %v2209_v47 }
  0x8b   :  { %1205 = vmatpush.bf16.msrb.mxu0 %v2053_v37  ;;  %v2471_v37 = vld [vmem:[#allocation5 + $0x94] sm:$0xf] }
  0x8c   :  { %1215 = vmatpush.bf16.msra.mxu3 %v2149_v52  ;;  %v2101_v39 = vor.u32 %v2471_v37, %v2098_v56  ;;  %v2170_v37 = vld [vmem:[#allocation5 + $0x128] sm:$0xf0] }
  0x8e   :  { %1188 = vmatpush.bf16.msrb.mxu2 %v2201_v62 }
  0x8f   :  { %1206 = vmatpush.bf16.msrb.mxu0 %v2045_v20  ;;  %v2088_v20 = vld [vmem:[#allocation5 + $0x80] sm:$0xf] }
  0x90   :  { %1216 = vmatpush.bf16.msra.mxu3 %v2141_v0  ;;  %v2089_v26 = vor.u32 %v2470_v42, %v2088_v20  ;;  %v2202_v0 = vld [vmem:[#allocation5 + $0x168] sm:$0xf0]  ;;  %v2487_v20 = vld [vmem:[#allocation5 + $0x114] sm:$0xf] }
  0x91   :  { %v2205_v1 = vor.u32 %v2497_v63, %v2202_v0  ;;  %v240_v0 = vperm.slane %v2854_v10, 2 }
  0x92   :  { %1180 = vmatpush.bf16.msrb.mxu1 %v2089_v26  ;;  %1189 = vmatpush.bf16.msrb.mxu2 %v2193_v8  ;;  %v2162_v26 = vld [vmem:[#allocation5 + $0x118] sm:$0xf0] }
  0x93   :  { %1207 = vmatpush.bf16.msrb.mxu0 %v2037_v51  ;;  %v2090_v51 = vld [vmem:[#allocation5 + $0x88] sm:$0xf0]  ;;  %v2165_v43 = vor.u32 %v2487_v20, %v2162_v26 }
  0x94   :  { %1217 = vmatpush.bf16.msra.mxu3 %v2133_v6  ;;  %v2093_v55 = vor.u32 %v2469_v49, %v2090_v51  ;;  %v2495_v6 = vld [vmem:[#allocation5 + $0x154] sm:$0xf]  ;;  %v2486_v49 = vld [vmem:[#allocation5 + $0x104] sm:$0xf0] }
  0x95   :  { %v2197_v11 = vor.u32 %v2495_v6, %v2194_v9 }
  0x96   :  { %1229 = vmatpush.bf16.msra.mxu1 %v2213_v50  ;;  %v2485_v50 = vld [vmem:[#allocation5 + $0x104] sm:$0xf] }
  0x97   :  { %1208 = vmatpush.bf16.msrb.mxu0 %v2029_v61 }
  0x98   :  { %1218 = vmatpush.bf16.msra.mxu3 %v2125_v12  ;;  %v239_v12 = vperm.slane %v2854_v10, 1  ;;  %v2516_v10 = vld [vmem:[#allocation7 + $0x78] sm:$0xff] }
  0x9a   :  { %1230 = vmatpush.bf16.msra.mxu1 %v2205_v1 }
  0x9b   :  { %1395 = vmatpush.bf16.msra.mxu0 %v2516_v10 }
  0x9c   :  { %1219 = vmatpush.bf16.msra.mxu3 %v2117_v19 }
  0x9e   :  { %1231 = vmatpush.bf16.msra.mxu1 %v2197_v11 }
  0xa0   :  { %1220 = vmatpush.bf16.msra.mxu3 %v2109_v29 }
  0xa2   :  { %1232 = vmatpush.bf16.msra.mxu1 %v2189_v18  ;;  %v2515_v18 = vld [vmem:[#allocation7 + $0x70] sm:$0xff] }
  0xa3   :  { %1396 = vmatpush.bf16.msra.mxu0 %v2515_v18 }
  0xa4   :  { %1221 = vmatpush.bf16.msra.mxu3 %v2101_v39 }
  0xa8   :  { %1222 = vmatpush.bf16.msra.mxu3 %v2093_v55 }
  0xb2   :  { %v739_v25 = vpop.f32.mrf.mxu3 }
  0xb7   :  { %v697_v16 = vpop.f32.mrf.mxu0 }
  0xb8   :  { %v698_v21 = vadd.f32 %v697_v16, %v238_v13  ;;  %v2185_v16 = vor.u32 %v2494_v53, %v2184_v14 }
  0xb9   :  { %v711_v22 = vpop.f32.mrf.mxu1 }
  0xba   :  { %v712_v30 = vadd.f32 %v711_v22, %v698_v21  ;;  %v741_v54 = vpop.f32.mrf.mxu3  ;;  %1190 = vmatpush.bf16.msrb.mxu2 %v2185_v16  ;;  %v2176_v21 = vld [vmem:[#allocation5 + $0x130] sm:$0xf]  ;;  %v2492_v22 = vld [vmem:[#allocation5 + $0x134] sm:$0xf0] }
  0xbb   :  { %v2177_v33 = vor.u32 %v2492_v22, %v2176_v21  ;;  %v2514_v21 = vld [vmem:[#allocation7 + $0x68] sm:$0xff]  ;;  %v2507_v22 = vld [vmem:[#allocation7 + $0x30] sm:$0xff] }
  0xbc   :  { %1397 = vmatpush.bf16.msra.mxu0 %v2514_v21 }
  0xbe   :  { %v725_v34 = vpop.f32.mrf.mxu2  ;;  %1191 = vmatpush.bf16.msrb.mxu2 %v2177_v33  ;;  %v2506_v33 = vld [vmem:[#allocation7 + $0x28] sm:$0xff] }
  0xbf   :  { %v699_v36 = vpop.f32.mrf.mxu0  ;;  %v726_v40 = vadd.f32 %v725_v34, %v712_v30  ;;  %v2489_v34 = vld [vmem:[#allocation5 + $0x124] sm:$0xf] }
  0xc0   :  { %v700_v38 = vadd.f32 %v699_v36, %v238_v13  ;;  %v2169_v36 = vor.u32 %v2490_v32, %v2168_v31  ;;  %v2173_v56 = vor.u32 %v2489_v34, %v2170_v37  ;;  %v2503_v31 = vld [vmem:[#allocation7 + $0x10] sm:$0xff]  ;;  %v2509_v32 = vld [vmem:[#allocation7 + $0x40] sm:$0xff]  ;;  %v2502_v34 = vld [vmem:[#allocation7 + $0x8] sm:$0xff] }
  0xc1   :  { %v713_v41 = vpop.f32.mrf.mxu1  ;;  %v740_v52 = vadd.f32 %v739_v25, %v726_v40  ;;  %v2181_v25 = vor.u32 %v2491_v23, %v2178_v24  ;;  %v2160_v40 = vld [vmem:[#allocation5 + $0x110] sm:$0xf]  ;;  %v2513_v23 = vld [vmem:[#allocation7 + $0x60] sm:$0xff]  ;;  %v2512_v24 = vld [vmem:[#allocation7 + $0x58] sm:$0xff] }
  0xc2   :  { %v714_v46 = vadd.f32 %v713_v41, %v700_v38  ;;  %1192 = vmatpush.bf16.msrb.mxu2 %v2169_v36  ;;  %v2488_v41 = vld [vmem:[#allocation5 + $0x114] sm:$0xf0]  ;;  %1398 = vmatpush.bf16.msra.mxu0 %v2513_v23  ;;  %v2501_v36 = vld [vmem:[#allocation7] sm:$0xff] }
  0xc3   :  { %v856_v2 = vmax.f32 %v740_v52, 0.0  ;;  %1233 = vmatpush.bf16.msra.mxu1 %v2181_v25  ;;  %v2161_v42 = vor.u32 %v2488_v41, %v2160_v40  ;;  %v2153_v52 = vor.u32 %v2486_v49, %v2152_v48  ;;  %v2505_v25 = vld [vmem:[#allocation7 + $0x20] sm:$0xff]  ;;  %v913_v41 = vld [vmem:[%s2911_s4] sm:$0x3] }
  0xc4   :  { %v916_v20 = vperm.slane %v913_v41, 1 }
  0xc6   :  { %v727_v57 = vpop.f32.mrf.mxu2  ;;  %1193 = vmatpush.bf16.msrb.mxu2 %v2161_v42  ;;  %1399 = vmatpush.bf16.msra.mxu0 %v2512_v24 }
  0xc7   :  { %v728_v61 = vadd.f32 %v727_v57, %v714_v46  ;;  %1234 = vmatpush.bf16.msra.mxu1 %v2173_v56  ;;  %v2524_v56 = vld [vmem:[%s2914_s7 + $0x38] sm:$0xff] }
  0xc9   :  { %v742_v3 = vadd.f32 %v741_v54, %v728_v61  ;;  %v2154_v54 = vld [vmem:[#allocation5 + $0x108] sm:$0xf0] }
  0xca   :  { %v2157_v57 = vor.u32 %v2485_v50, %v2154_v54  ;;  %1194 = vmatpush.bf16.msrb.mxu2 %v2153_v52 }
  0xcb   :  { %v859_v7 = vmax.f32 %v742_v3, 0.0  ;;  %1235 = vmatpush.bf16.msra.mxu1 %v2165_v43 }
  0xcd   :  { %v862_v60 = vpack.c.bf16 %v859_v7, %v856_v2 }
  0xce   :  { %v753_v13 = vpop.f32.mrf.mxu3 }
  0xcf   :  { %1167 = vmatmul.bf16.vlgmr.msrb.gmra.mxu3 %v862_v60  ;;  %1209 = vmatmul.bf16.vlgmr.msrb.gmra.mxu0 %v862_v60  ;;  %v754_v19 = vadd.f32 %v753_v13, %v239_v12  ;;  %v795_v28 = vpop.f32.mrf.mxu2 }
  0xd0   :  { %1236 = vmatpush.bf16.msra.mxu1 %v2157_v57  ;;  %1480 = vmatpush.bf16.msrb.mxu3 %v2524_v56 }
  0xd6   :  { %v755_v35 = vpop.f32.mrf.mxu3 }
  0xd7   :  { %v767_v27 = vpop.f32.mrf.mxu0  ;;  %v756_v39 = vadd.f32 %v755_v35, %v239_v12  ;;  %v797_v51 = vpop.f32.mrf.mxu2 }
  0xd8   :  { %v768_v29 = vadd.f32 %v767_v27, %v754_v19  ;;  %v2508_v19 = vld [vmem:[#allocation7 + $0x38] sm:$0xff]  ;;  %v2511_v27 = vld [vmem:[#allocation7 + $0x50] sm:$0xff] }
  0xd9   :  { %v781_v30 = vpop.f32.mrf.mxu1  ;;  %1381 = vmatpush.bf16.msra.mxu2 %v2508_v19  ;;  %1400 = vmatpush.bf16.msra.mxu0 %v2511_v27  ;;  %v2528_v27 = vld [vmem:[#allocation8 + $0x18] sm:$0xff] }
  0xda   :  { %v782_v38 = vadd.f32 %v781_v30, %v768_v29  ;;  %v2510_v29 = vld [vmem:[#allocation7 + $0x48] sm:$0xff] }
  0xdc   :  { %v796_v45 = vadd.f32 %v795_v28, %v782_v38  ;;  %v2504_v28 = vld [vmem:[#allocation7 + $0x18] sm:$0xff] }
  0xdd   :  { %1382 = vmatpush.bf16.msra.mxu2 %v2507_v22  ;;  %1401 = vmatpush.bf16.msra.mxu0 %v2510_v29  ;;  %v2526_v29 = vld [vmem:[#allocation8 + $0x8] sm:$0xff] }
  0xde   :  { %v857_v58 = vmax.f32 %v796_v45, 0.0  ;;  %v915_v45 = vperm.slane %v913_v41, 0 }
  0xdf   :  { %v769_v44 = vpop.f32.mrf.mxu0 }
  0xe0   :  { %v770_v46 = vadd.f32 %v769_v44, %v756_v39 }
  0xe1   :  { %v783_v47 = vpop.f32.mrf.mxu1  ;;  %1383 = vmatpush.bf16.msra.mxu2 %v2506_v33  ;;  %1402 = vmatpush.bf16.msra.mxu0 %v2509_v32  ;;  %v2539_v32 = vld [vmem:[#allocation10 + $0x30] sm:$0xff] }
  0xe2   :  { %v784_v55 = vadd.f32 %v783_v47, %v770_v46 }
  0xe4   :  { %v798_v59 = vadd.f32 %v797_v51, %v784_v55 }
  0xe5   :  { %1384 = vmatpush.bf16.msra.mxu2 %v2505_v25 }
  0xe6   :  { %v860_v61 = vmax.f32 %v798_v59, 0.0 }
  0xe7   :  { %v823_v1 = vpop.f32.mrf.mxu2 }
  0xe8   :  { %v863_v62 = vpack.c.bf16 %v860_v61, %v857_v58 }
  0xe9   :  { %v851_v3 = vpop.f32.mrf.mxu1  ;;  %1385 = vmatpush.bf16.msra.mxu2 %v2504_v28  ;;  %v2527_v28 = vld [vmem:[#allocation8 + $0x10] sm:$0xff] }
  0xea   :  { %1181 = vmatmul.bf16.vlgmr.msrb.gmra.mxu1 %v863_v62  ;;  %1223 = vmatmul.bf16.vlgmr.msra.gmra.mxu3 %v863_v62 }
  0xed   :  { %1386 = vmatpush.bf16.msra.mxu2 %v2503_v31  ;;  %v2540_v31 = vld [vmem:[#allocation10 + $0x38] sm:$0xff] }
  0xee   :  { %v809_v63 = vpop.f32.mrf.mxu3 }
  0xef   :  { %v810_v2 = vadd.f32 %v809_v63, %v240_v0  ;;  %v825_v8 = vpop.f32.mrf.mxu2 }
  0xf1   :  { %v824_v6 = vadd.f32 %v823_v1, %v810_v2  ;;  %v853_v14 = vpop.f32.mrf.mxu1  ;;  %1387 = vmatpush.bf16.msra.mxu2 %v2502_v34  ;;  %v2538_v34 = vld [vmem:[#allocation10 + $0x28] sm:$0xff] }
  0xf5   :  { %1388 = vmatpush.bf16.msra.mxu2 %v2501_v36 }
  0xf6   :  { %v811_v4 = vpop.f32.mrf.mxu3 }
  0xf7   :  { %v837_v5 = vpop.f32.mrf.mxu0  ;;  %v812_v7 = vadd.f32 %v811_v4, %v240_v0 }
  0xf8   :  { %v838_v9 = vadd.f32 %v837_v5, %v824_v6  ;;  %v2523_v5 = vld [vmem:[%s2914_s7 + $0x30] sm:$0xff]  ;;  %v2522_v6 = vld [vmem:[%s2914_s7 + $0x28] sm:$0xff] }
  0xf9   :  { %v826_v11 = vadd.f32 %v825_v8, %v812_v7  ;;  %1481 = vmatpush.bf16.msrb.mxu3 %v2523_v5  ;;  %v2521_v7 = vld [vmem:[%s2914_s7 + $0x20] sm:$0xff]  ;;  %v2520_v8 = vld [vmem:[%s2914_s7 + $0x18] sm:$0xff] }
  0xfa   :  { %v852_v12 = vadd.f32 %v851_v3, %v838_v9  ;;  %v2519_v9 = vld [vmem:[%s2914_s7 + $0x10] sm:$0xff] }
  0xfc   :  { %v858_v15 = vmax.f32 %v852_v12, 0.0  ;;  %v2532_v12 = vld [vmem:[#allocation8 + $0x38] sm:$0xff] }
  0xfd   :  { %1482 = vmatpush.bf16.msrb.mxu3 %v2522_v6  ;;  %1567 = vmatpush.bf16.msrb.mxu1 %v2532_v12  ;;  %v1673_v6 = vld [vmem:[%s2920_s13] sm:$0x1] }
  0xff   :  { %v839_v60 = vpop.f32.mrf.mxu0 }
 0x100   :  { %v840_v13 = vadd.f32 %v839_v60, %v826_v11  ;;  %v2518_v11 = vld [vmem:[%s2914_s7 + $0x8] sm:$0xff]  ;;  %v2517_v60 = vld [vmem:[%s2914_s7] sm:$0xff] }
 0x101   :  { %1483 = vmatpush.bf16.msrb.mxu3 %v2521_v7  ;;  %v1675_v7 = vstv %s2921_s14 }
 0x102   :  { %v854_v53 = vadd.f32 %v853_v14, %v840_v13  ;;  %v2531_v13 = vld [vmem:[#allocation8 + $0x30] sm:$0xff]  ;;  %v2530_v14 = vld [vmem:[#allocation8 + $0x28] sm:$0xff] }
 0x103   :  { %1568 = vmatpush.bf16.msrb.mxu1 %v2531_v13 }
 0x104   :  { %v861_v16 = vmax.f32 %v854_v53, 0.0  ;;  %v2529_v53 = vld [vmem:[#allocation8 + $0x20] sm:$0xff] }
 0x105   :  { %1484 = vmatpush.bf16.msrb.mxu3 %v2520_v8 }
 0x106   :  { %v864_v17 = vpack.c.bf16 %v861_v16, %v858_v15 }
 0x107   :  { %1569 = vmatpush.bf16.msrb.mxu1 %v2530_v14 }
 0x108   :  { %1195 = vmatmul.bf16.vlgmr.msrb.gmra.mxu2 %v864_v17  ;;  %1237 = vmatmul.bf16.vlgmr.msra.gmra.mxu1 %v864_v17  ;;  %v2553_v17 = vld [vmem:[%s2913_s6] ss:$0 sm:$0xff] }
 0x109   :  { %1485 = vmatpush.bf16.msrb.mxu3 %v2519_v9  ;;  %1654 = vmatpush.bf16.msrb.mxu2 %v2540_v31 }
 0x10b   :  { %1570 = vmatpush.bf16.msrb.mxu1 %v2529_v53 }
 0x10d   :  { %1486 = vmatpush.bf16.msrb.mxu3 %v2518_v11  ;;  %1655 = vmatpush.bf16.msrb.mxu2 %v2539_v32 }
 0x10f   :  { %1571 = vmatpush.bf16.msrb.mxu1 %v2528_v27 }
 0x111   :  { %1487 = vmatpush.bf16.msrb.mxu3 %v2517_v60  ;;  %1656 = vmatpush.bf16.msrb.mxu2 %v2538_v34 }
 0x113   :  { %1572 = vmatpush.bf16.msrb.mxu1 %v2527_v28 }
 0x117   :  { %1573 = vmatpush.bf16.msrb.mxu1 %v2526_v29 }
 0x14c   :  { %v1210_v38 = vpop.f32.mrf.mxu0 }
 0x14d   :  { %v1211_v43 = vadd.f32 %v1210_v38, %v916_v20 }
 0x152   :  { %v1168_v30 = vpop.f32.mrf.mxu3 }
 0x153   :  { %v1169_v52 = vadd.f32 %v1168_v30, %v915_v45  ;;  %v2525_v30 = vld [vmem:[#allocation8] sm:$0xff] }
 0x154   :  { %v1212_v26 = vpop.f32.mrf.mxu0  ;;  %1574 = vmatpush.bf16.msrb.mxu1 %v2525_v30 }
 0x155   :  { %v1213_v46 = vadd.f32 %v1212_v26, %v916_v20 }
 0x15a   :  { %v1170_v37 = vpop.f32.mrf.mxu3 }
 0x15b   :  { %v1171_v55 = vadd.f32 %v1170_v37, %v915_v45  ;;  %v2554_v37 = vld [vmem:[%s2915_s8] ss:$0 sm:$0xff]  ;;  %v2534_v45 = vld [vmem:[#allocation10 + $0x8] sm:$0xff] }
 0x167   :  { %v1182_v35 = vpop.f32.mrf.mxu1 }
 0x168   :  { %v1183_v57 = vadd.f32 %v1182_v35, %v1169_v52  ;;  %v2537_v35 = vld [vmem:[#allocation10 + $0x20] sm:$0xff] }
 0x169   :  { %1657 = vmatpush.bf16.msrb.mxu2 %v2537_v35 }
 0x16d   :  { %v1224_v40 = vpop.f32.mrf.mxu3 }
 0x16e   :  { %v1225_v47 = vadd.f32 %v1224_v40, %v1211_v43  ;;  %v2536_v43 = vld [vmem:[#allocation10 + $0x18] sm:$0xff] }
 0x16f   :  { %v1184_v39 = vpop.f32.mrf.mxu1  ;;  %1658 = vmatpush.bf16.msrb.mxu2 %v2536_v43 }
 0x170   :  { %v1185_v61 = vadd.f32 %v1184_v39, %v1171_v55 }
 0x175   :  { %v1226_v44 = vpop.f32.mrf.mxu3 }
 0x176   :  { %v1227_v49 = vadd.f32 %v1226_v44, %v1213_v46  ;;  %v2535_v44 = vld [vmem:[#allocation10 + $0x10] sm:$0xff]  ;;  %v2533_v46 = vld [vmem:[#allocation10] sm:$0xff] }
 0x177   :  { %1659 = vmatpush.bf16.msrb.mxu2 %v2535_v44 }
 0x17b   :  { %1660 = vmatpush.bf16.msrb.mxu2 %v2534_v45 }
 0x17f   :  { %1661 = vmatpush.bf16.msrb.mxu2 %v2533_v46 }
 0x185   :  { %v1238_v42 = vpop.f32.mrf.mxu1 }
 0x186   :  { %v1239_v50 = vadd.f32 %v1238_v42, %v1225_v47 }
 0x188   :  { %v1244_v58 = vmax.f32 %v1239_v50, 0.0 }
 0x18b   :  { %v1196_v48 = vpop.f32.mrf.mxu2 }
 0x18c   :  { %v1197_v62 = vadd.f32 %v1196_v48, %v1183_v57  ;;  %v2555_v48 = vld [vmem:[%s2917_s10] ss:$0 sm:$0xff] }
 0x18d   :  { %v1240_v51 = vpop.f32.mrf.mxu1 }
 0x18e   :  { %v1241_v54 = vadd.f32 %v1240_v51, %v1227_v49  ;;  %v1243_v2 = vmax.f32 %v1197_v62, 0.0 }
 0x190   :  { %v1246_v59 = vmax.f32 %v1241_v54, 0.0 }
 0x192   :  { %v1248_v63 = vpack.c.bf16 %v1246_v59, %v1244_v58 }
 0x193   :  { %v1198_v0 = vpop.f32.mrf.mxu2 }
 0x194   :  { %v1199_v1 = vadd.f32 %v1198_v0, %v1185_v61  ;;  %1403 = vmatmul.bf16.vlgmr.msra.gmra.mxu0 %v1248_v63  ;;  %v2556_v61 = vld [vmem:[%s2919_s12] ss:$0 sm:$0xff] }
 0x196   :  { %v1245_v3 = vmax.f32 %v1199_v1, 0.0 }
 0x198   :  { %v1247_v4 = vpack.c.bf16 %v1245_v3, %v1243_v2 }
 0x19a   :  { %1389 = vmatmul.bf16.vlgmr.msra.gmra.mxu2 %v1247_v4 }
 0x211   :  { %v1404_v15 = vpop.f32.mrf.mxu0 }
 0x219   :  { %v1406_v22 = vpop.f32.mrf.mxu0 }
 0x21d   :  { %v1390_v16 = vpop.f32.mrf.mxu2 }
 0x21e   :  { %v1391_v10 = vadd.f32 %v2553_v17, %v1390_v16 }
 0x220   :  { %v1405_v19 = vadd.f32 %v1404_v15, %v1391_v10 }
 0x222   :  { %v1409_v33 = vmax.f32 %v1405_v19, 0.0 }
 0x225   :  { %v1392_v18 = vpop.f32.mrf.mxu2 }
 0x226   :  { %v1393_v21 = vadd.f32 %v2553_v17, %v1392_v18 }
 0x228   :  { %v1407_v23 = vadd.f32 %v1406_v22, %v1393_v21 }
 0x22a   :  { %v1410_v24 = vmax.f32 %v1407_v23, 0.0 }
 0x22c   :  { %v1411_v25 = vpack.c.bf16 %v1410_v24, %v1409_v33 }
 0x22e   :  { %1488 = vmatmul.bf16.vlgmr.msrb.gmra.mxu3 %v1411_v25 }
 0x2b1   :  { %v1489_v36 = vpop.f32.mrf.mxu3 }
 0x2b2   :  { %v1490_v56 = vadd.f32 %v2554_v37, %v1489_v36 }
 0x2b4   :  { %v1494_v39 = vmax.f32 %v1490_v56, 0.0 }
 0x2b6   :  { %v1496_v20 = vmin.f32 %v1494_v39, 6.0 }
 0x2b9   :  { %v1491_v38 = vpop.f32.mrf.mxu3 }
 0x2ba   :  { %v1492_v40 = vadd.f32 %v2554_v37, %v1491_v38 }
 0x2bc   :  { %v1495_v41 = vmax.f32 %v1492_v40, 0.0 }
 0x2be   :  { %v1497_v42 = vmin.f32 %v1495_v41, 6.0 }
 0x2c0   :  { %v1498_v26 = vpack.c.bf16 %v1497_v42, %v1496_v20 }
 0x2c2   :  { %1575 = vmatmul.bf16.vlgmr.msrb.gmra.mxu1 %v1498_v26 }
 0x33f   :  { %v1576_v47 = vpop.f32.mrf.mxu1 }
 0x340   :  { %v1577_v49 = vadd.f32 %v2555_v48, %v1576_v47 }
 0x342   :  { %v1581_v51 = vmax.f32 %v1577_v49, 0.0 }
 0x344   :  { %v1583_v55 = vmin.f32 %v1581_v51, 6.0 }
 0x347   :  { %v1578_v50 = vpop.f32.mrf.mxu1 }
 0x348   :  { %v1579_v52 = vadd.f32 %v2555_v48, %v1578_v50 }
 0x34a   :  { %v1582_v54 = vmax.f32 %v1579_v52, 0.0 }
 0x34c   :  { %v1584_v57 = vmin.f32 %v1582_v54, 6.0 }
 0x34e   :  { %v1585_v58 = vpack.c.bf16 %v1584_v57, %v1583_v55 }
 0x350   :  { %1662 = vmatmul.bf16.vlgmr.msrb.gmra.mxu2 %v1585_v58 }
 0x3d3   :  { %v1663_v59 = vpop.f32.mrf.mxu2 }
 0x3d4   :  { %v1664_v62 = vadd.f32 %v2556_v61, %v1663_v59 }
 0x3d6   :  { %v1668_v0 = vmax.f32 %v1664_v62, 0.0 }
 0x3d8   :  { %v1670_v3 = vmin.f32 %v1668_v0, 6.0 }
 0x3db   :  { %v1665_v63 = vpop.f32.mrf.mxu2 }
 0x3dc   :  { %v1666_v1 = vadd.f32 %v2556_v61, %v1665_v63 }
 0x3de   :  { %v1669_v2 = vmax.f32 %v1666_v1, 0.0 }
 0x3e0   :  { %v1671_v4 = vmin.f32 %v1669_v2, 6.0 }
 0x3e2   :  { %v1672_v5 = vpack.c.bf16 %v1671_v4, %v1670_v3 }
 0x3e4   :  { %1683 = vmatpush.bf16.xpose.msrb.mxu0 %v1672_v5 }
 0x3eb   :  { %1684 = vmatmul.bf16.vlgmr.msrb.gmra.mxu0 %v1673_v6 }
 0x468   :  { %v1685_v8 = vpop.f32.mrf.mxu0 }
 0x469   :  { %v1686_v9 = vadd.f32 %v1685_v8, %v1675_v7 }
 0x46b   :  { %v1689_v11 = vsub.f32 0.0, %v1686_v9 }
 0x46d   :  { %v1690_v60 = vmul.f32 1.442695, %v1689_v11 }
 0x46f   :  { %2557 = vpow2.f32 %v1690_v60 }
 0x470   :  { %v1687_v12 = vpop.f32.mrf.mxu0 }
 0x475   :  { %v2558_v13 = vpop.eup %2557 }
 0x476   :  { %v1692_v14 = vadd.f32 1.0, %v2558_v13 }
 0x478   :  { %2559 = vrcp.f32 %v1692_v14 }
 0x47e   :  { %v2560_v53 = vpop.eup %2559 }
 0x47f   :  { %1695 = vst.msk [vmem:[%s2922_s15] sm:$0x1] %vm1694_vm3, %v2560_v53 }
 0x480   :  { %1700 = vsyncpa [#allocation4], 1 }
 0x481   :  { %1701 = vsyncpa [#allocation6], 1 }
 0x482   :  { %1702 = vsyncpa [#allocation9], 1 }

</bundles_post_ra>
